<compile_context>
chip_gen: v7x
topology: tpu7x:2x2x1
jax: 0.10.0
libtpu: 0.0.40
codegen_flags: <defaults>
</compile_context>

<pallas_src>
import jax
import jax.numpy as jnp
from jax.experimental import pallas as pl
from jax.experimental.pallas import tpu as pltpu

# ---- scaled-down ViT-small-like teacher backbone config ----
IMG = 16          # image height/width
PATCH = 8         # patch size
IN_CH = 3         # RGB
EMBED_DIM = 32    # 384 in ViT-small
DEPTH = 2         # 12 in ViT-small
NUM_HEADS = 2     # 6 in ViT-small
MLP_RATIO = 4
LN_EPS = 1e-6
INIT_VALUES = 1e-5  # LayerScale init (init_values=1e-05 in the module)


# ----------------------------- in-kernel helpers ---------------------------

def _layernorm(v, w, b):
    mu = jnp.mean(v, axis=-1, keepdims=True)
    var = jnp.mean((v - mu) ** 2, axis=-1, keepdims=True)
    return (v - mu) * jax.lax.rsqrt(var + LN_EPS) * w + b


def _gelu(v):
    # exact GELU (torch.nn.GELU default, erf form)
    return 0.5 * v * (1.0 + jax.lax.erf(v * 0.7071067811865475))


# ----------------------------- fused forward kernel ------------------------

def _fused_vit_kernel(patches_ref, wpat_ref, bpat_ref, cls_ref, pos_ref,
                      ln1w_ref, ln1b_ref,
                      wq_ref, bq_ref, wk_ref, bk_ref, wv_ref, bv_ref,
                      wproj_ref, bproj_ref, g1_ref,
                      ln2w_ref, ln2b_ref,
                      wfc1_ref, bfc1_ref, wfc2_ref, bfc2_ref, g2_ref,
                      normw_ref, normb_ref,
                      o_ref):
    """One batch element per grid step; whole ViT forward, activation resident."""
    depth = ln1w_ref.shape[0]
    num_heads = wq_ref.shape[1]
    head_dim = wq_ref.shape[3]
    scale = float(head_dim) ** -0.5

    # ---- patch embedding (per-patch flatten done in wrapper) ----
    patches = patches_ref[0]                                        # (np, C*p*p)
    tokens = jnp.dot(patches, wpat_ref[...],
                     preferred_element_type=jnp.float32) + bpat_ref[...]

    # ---- prepend CLS token, add learned pos-embedding (eval: no dropout) ----
    seq = jnp.concatenate([cls_ref[...], tokens], axis=0) + pos_ref[...]   # (N, D)

    # ---- transformer blocks: layer loop inside the kernel ----
    for l in range(depth):
        # attention branch (pre-LN, LayerScale, drop-path = identity)
        h1 = _layernorm(seq, ln1w_ref[l], ln1b_ref[l])
        attn = jnp.zeros(seq.shape, jnp.float32)
        for h in range(num_heads):
            # per-head weights pre-split in the wrapper -> no lane-offset slicing
            qh = jnp.dot(h1, wq_ref[l, h],
                         preferred_element_type=jnp.float32) + bq_ref[l, h]
            kh = jnp.dot(h1, wk_ref[l, h],
                         preferred_element_type=jnp.float32) + bk_ref[l, h]
            vh = jnp.dot(h1, wv_ref[l, h],
                         preferred_element_type=jnp.float32) + bv_ref[l, h]
            s = jax.lax.dot_general(qh * scale, kh,
                                    (((1,), (1,)), ((), ())),
                                    preferred_element_type=jnp.float32)    # (N, N)
            s = s - jnp.max(s, axis=-1, keepdims=True)
            e = jnp.exp(s)
            prob = e * pl.reciprocal(jnp.sum(e, axis=-1, keepdims=True),
                                     approx=True)
            oh = jnp.dot(prob, vh, preferred_element_type=jnp.float32)     # (N, hd)
            # fold output projection per head -> no lane-axis concat needed
            attn = attn + jnp.dot(oh, wproj_ref[l, h],
                                  preferred_element_type=jnp.float32)
        attn = attn + bproj_ref[l]
        seq = seq + g1_ref[l] * attn

        # MLP branch
        h2 = _layernorm(seq, ln2w_ref[l], ln2b_ref[l])
        y = jnp.dot(h2, wfc1_ref[l],
                    preferred_element_type=jnp.float32) + bfc1_ref[l]      # (N, hidden)
        y = _gelu(y)
        y = jnp.dot(y, wfc2_ref[l],
                    preferred_element_type=jnp.float32) + bfc2_ref[l]      # (N, D)
        seq = seq + g2_ref[l] * y

    # ---- final LayerNorm, emit CLS token only ----
    o_ref[0] = _layernorm(seq[0:1, :], normw_ref[...], normb_ref[...])


# ----------------------------- parameters (deterministic) ------------------

def init_params(key):
    keys = jax.random.split(key, 8 + 4 * DEPTH)
    kit = iter(keys)

    def nrm(shape, std=0.02):
        return (std * jax.random.normal(next(kit), shape)).astype(jnp.float32)

    n_tokens = (IMG // PATCH) ** 2 + 1
    hidden = EMBED_DIM * MLP_RATIO
    params = {
        'patch_w': nrm((EMBED_DIM, IN_CH, PATCH, PATCH)),   # conv2d weight (D,C,p,p)
        'patch_b': jnp.zeros((EMBED_DIM,), jnp.float32),
        'cls_token': nrm((1, 1, EMBED_DIM)),
        'pos_embed': nrm((1, n_tokens, EMBED_DIM)),
        'norm_w': jnp.ones((1, EMBED_DIM), jnp.float32),
        'norm_b': jnp.zeros((1, EMBED_DIM), jnp.float32),
        'blocks': [],
    }
    for _ in range(DEPTH):
        params['blocks'].append({
            'ln1_w': jnp.ones((1, EMBED_DIM), jnp.float32),
            'ln1_b': jnp.zeros((1, EMBED_DIM), jnp.float32),
            'w_qkv': nrm((EMBED_DIM, 3 * EMBED_DIM)),
            'b_qkv': jnp.zeros((1, 3 * EMBED_DIM), jnp.float32),
            'w_proj': nrm((EMBED_DIM, EMBED_DIM)),
            'b_proj': jnp.zeros((1, EMBED_DIM), jnp.float32),
            'gamma1': jnp.full((1, EMBED_DIM), INIT_VALUES, jnp.float32),
            'ln2_w': jnp.ones((1, EMBED_DIM), jnp.float32),
            'ln2_b': jnp.zeros((1, EMBED_DIM), jnp.float32),
            'w_fc1': nrm((EMBED_DIM, hidden)),
            'b_fc1': jnp.zeros((1, hidden), jnp.float32),
            'w_fc2': nrm((hidden, EMBED_DIM)),
            'b_fc2': jnp.zeros((1, EMBED_DIM), jnp.float32),
            'gamma2': jnp.full((1, EMBED_DIM), INIT_VALUES, jnp.float32),
        })
    return params


# ----------------------------- param packing (trace-time glue) -------------

def _pack_blocks(blocks):
    D = EMBED_DIM
    H = NUM_HEADS
    hd = D // H
    L = len(blocks)

    def stk(name):
        return jnp.stack([b[name] for b in blocks], axis=0)

    w_qkv = stk('w_qkv')                       # (L, D, 3D)
    b_qkv = stk('b_qkv')                       # (L, 1, 3D)

    def split_w(i):
        w = w_qkv[:, :, i * D:(i + 1) * D]     # (L, D, D)
        return w.reshape(L, D, H, hd).transpose(0, 2, 1, 3)   # (L, H, D, hd)

    def split_b(i):
        b = b_qkv[:, 0, i * D:(i + 1) * D]     # (L, D)
        return b.reshape(L, H, 1, hd)          # (L, H, 1, hd)

    return dict(
        ln1_w=stk('ln1_w'), ln1_b=stk('ln1_b'),
        w_q=split_w(0), b_q=split_b(0),
        w_k=split_w(1), b_k=split_b(1),
        w_v=split_w(2), b_v=split_b(2),
        w_proj=stk('w_proj').reshape(L, H, hd, D),             # (L, H, hd, D)
        b_proj=stk('b_proj'),
        gamma1=stk('gamma1'),
        ln2_w=stk('ln2_w'), ln2_b=stk('ln2_b'),
        w_fc1=stk('w_fc1'), b_fc1=stk('b_fc1'),
        w_fc2=stk('w_fc2'), b_fc2=stk('b_fc2'),
        gamma2=stk('gamma2'),
    )


# ----------------------------- forward (== IBOT.forward) -------------------

def ibot_forward(params, x):
    """x: (B, C, H, W) NCHW float32 -> CLS embeddings (B, EMBED_DIM)."""
    B, C, Himg, Wimg = x.shape
    p = PATCH
    nh, nw = Himg // p, Wimg // p
    n_patch = nh * nw
    cpp = C * p * p
    n_tok = n_patch + 1
    D = EMBED_DIM

    # Patch-embed conv(stride=patch) == per-patch flatten + matmul (glue reshape).
    patches = x.reshape(B, C, nh, p, nw, p).transpose(0, 2, 4, 1, 3, 5)
    patches = patches.reshape(B, n_patch, cpp)

    w_patch = params['patch_w'].reshape(D, cpp).T              # (cpp, D)
    b_patch = params['patch_b'].reshape(1, D)
    cls_tok = params['cls_token'].reshape(1, D)
    pos = params['pos_embed'].reshape(n_tok, D)
    pk = _pack_blocks(params['blocks'])

    inputs = (patches, w_patch, b_patch, cls_tok, pos,
              pk['ln1_w'], pk['ln1_b'],
              pk['w_q'], pk['b_q'], pk['w_k'], pk['b_k'], pk['w_v'], pk['b_v'],
              pk['w_proj'], pk['b_proj'], pk['gamma1'],
              pk['ln2_w'], pk['ln2_b'],
              pk['w_fc1'], pk['b_fc1'], pk['w_fc2'], pk['b_fc2'], pk['gamma2'],
              params['norm_w'], params['norm_b'])

    def _const_spec(a):
        nd = a.ndim
        return pl.BlockSpec(a.shape, lambda b, _nd=nd: (0,) * _nd)

    in_specs = [pl.BlockSpec((1, n_patch, cpp), lambda b: (b, 0, 0))]
    in_specs += [_const_spec(a) for a in inputs[1:]]

    out = pl.pallas_call(
        _fused_vit_kernel,
        out_shape=jax.ShapeDtypeStruct((B, 1, D), jnp.float32),
        grid_spec=pltpu.PrefetchScalarGridSpec(
            num_scalar_prefetch=0,
            grid=(B,),
            in_specs=in_specs,
            out_specs=pl.BlockSpec((1, 1, D), lambda b: (b, 0, 0)),
        ),
        compiler_params=pltpu.CompilerParams(
            dimension_semantics=("parallel",)),
    )(*inputs)
    return out.reshape(B, D)

# TODO(synk): forward_teacher/forward_student and the DINO projection heads are
# not part of IBOT.forward and are omitted (forward only calls teacher_backbone).


if __name__ == "__main__":
    key = jax.random.PRNGKey(0)
    pkey, xkey = jax.random.split(key)
    params = init_params(pkey)
    x = jax.random.normal(xkey, (2, IN_CH, IMG, IMG), dtype=jnp.float32)

    out = jax.jit(lambda xx: ibot_forward(params, xx))(x)
    jax.block_until_ready(out)
    assert out.shape == (2, EMBED_DIM) and out.dtype == jnp.float32
    print("KERNEL_OK")
</pallas_src>

<mosaic_0001>
module attributes {stable_mosaic.version = 11 : i64} {
  func.func @_fused_vit_kernel(%arg0: i32, %arg1: memref<1x4x192xf32, #tpu.memory_space<vmem>>, %arg2: memref<192x32xf32, #tpu.memory_space<vmem>>, %arg3: memref<1x32xf32, #tpu.memory_space<vmem>>, %arg4: memref<1x32xf32, #tpu.memory_space<vmem>>, %arg5: memref<5x32xf32, #tpu.memory_space<vmem>>, %arg6: memref<2x1x32xf32, #tpu.memory_space<vmem>>, %arg7: memref<2x1x32xf32, #tpu.memory_space<vmem>>, %arg8: memref<2x2x32x16xf32, #tpu.memory_space<vmem>>, %arg9: memref<2x2x1x16xf32, #tpu.memory_space<vmem>>, %arg10: memref<2x2x32x16xf32, #tpu.memory_space<vmem>>, %arg11: memref<2x2x1x16xf32, #tpu.memory_space<vmem>>, %arg12: memref<2x2x32x16xf32, #tpu.memory_space<vmem>>, %arg13: memref<2x2x1x16xf32, #tpu.memory_space<vmem>>, %arg14: memref<2x2x16x32xf32, #tpu.memory_space<vmem>>, %arg15: memref<2x1x32xf32, #tpu.memory_space<vmem>>, %arg16: memref<2x1x32xf32, #tpu.memory_space<vmem>>, %arg17: memref<2x1x32xf32, #tpu.memory_space<vmem>>, %arg18: memref<2x1x32xf32, #tpu.memory_space<vmem>>, %arg19: memref<2x32x128xf32, #tpu.memory_space<vmem>>, %arg20: memref<2x1x128xf32, #tpu.memory_space<vmem>>, %arg21: memref<2x128x32xf32, #tpu.memory_space<vmem>>, %arg22: memref<2x1x32xf32, #tpu.memory_space<vmem>>, %arg23: memref<2x1x32xf32, #tpu.memory_space<vmem>>, %arg24: memref<1x32xf32, #tpu.memory_space<vmem>>, %arg25: memref<1x32xf32, #tpu.memory_space<vmem>>, %arg26: memref<1x1x32xf32, #tpu.memory_space<vmem>>) attributes {dimension_semantics = [#tpu.dimension_semantics<parallel>], iteration_bounds = array<i64: 2>, scalar_prefetch = 0 : i64, scratch_operands = 0 : i64, tpu.core_type = #tpu.core_type<tc>, window_params = [{transform_indices = @transform_0, window_bounds = array<i64: 1, 4, 192>}, {pipeline_mode = #tpu.pipeline_mode<synchronous>, transform_indices = @transform_1, window_bounds = array<i64: 192, 32>}, {pipeline_mode = #tpu.pipeline_mode<synchronous>, transform_indices = @transform_2, window_bounds = array<i64: 1, 32>}, {pipeline_mode = #tpu.pipeline_mode<synchronous>, transform_indices = @transform_3, window_bounds = array<i64: 1, 32>}, {pipeline_mode = #tpu.pipeline_mode<synchronous>, transform_indices = @transform_4, window_bounds = array<i64: 5, 32>}, {pipeline_mode = #tpu.pipeline_mode<synchronous>, transform_indices = @transform_5, window_bounds = array<i64: 2, 1, 32>}, {pipeline_mode = #tpu.pipeline_mode<synchronous>, transform_indices = @transform_6, window_bounds = array<i64: 2, 1, 32>}, {pipeline_mode = #tpu.pipeline_mode<synchronous>, transform_indices = @transform_7, window_bounds = array<i64: 2, 2, 32, 16>}, {pipeline_mode = #tpu.pipeline_mode<synchronous>, transform_indices = @transform_8, window_bounds = array<i64: 2, 2, 1, 16>}, {pipeline_mode = #tpu.pipeline_mode<synchronous>, transform_indices = @transform_9, window_bounds = array<i64: 2, 2, 32, 16>}, {pipeline_mode = #tpu.pipeline_mode<synchronous>, transform_indices = @transform_10, window_bounds = array<i64: 2, 2, 1, 16>}, {pipeline_mode = #tpu.pipeline_mode<synchronous>, transform_indices = @transform_11, window_bounds = array<i64: 2, 2, 32, 16>}, {pipeline_mode = #tpu.pipeline_mode<synchronous>, transform_indices = @transform_12, window_bounds = array<i64: 2, 2, 1, 16>}, {pipeline_mode = #tpu.pipeline_mode<synchronous>, transform_indices = @transform_13, window_bounds = array<i64: 2, 2, 16, 32>}, {pipeline_mode = #tpu.pipeline_mode<synchronous>, transform_indices = @transform_14, window_bounds = array<i64: 2, 1, 32>}, {pipeline_mode = #tpu.pipeline_mode<synchronous>, transform_indices = @transform_15, window_bounds = array<i64: 2, 1, 32>}, {pipeline_mode = #tpu.pipeline_mode<synchronous>, transform_indices = @transform_16, window_bounds = array<i64: 2, 1, 32>}, {pipeline_mode = #tpu.pipeline_mode<synchronous>, transform_indices = @transform_17, window_bounds = array<i64: 2, 1, 32>}, {pipeline_mode = #tpu.pipeline_mode<synchronous>, transform_indices = @transform_18, window_bounds = array<i64: 2, 32, 128>}, {pipeline_mode = #tpu.pipeline_mode<synchronous>, transform_indices = @transform_19, window_bounds = array<i64: 2, 1, 128>}, {pipeline_mode = #tpu.pipeline_mode<synchronous>, transform_indices = @transform_20, window_bounds = array<i64: 2, 128, 32>}, {pipeline_mode = #tpu.pipeline_mode<synchronous>, transform_indices = @transform_21, window_bounds = array<i64: 2, 1, 32>}, {pipeline_mode = #tpu.pipeline_mode<synchronous>, transform_indices = @transform_22, window_bounds = array<i64: 2, 1, 32>}, {pipeline_mode = #tpu.pipeline_mode<synchronous>, transform_indices = @transform_23, window_bounds = array<i64: 1, 32>}, {pipeline_mode = #tpu.pipeline_mode<synchronous>, transform_indices = @transform_24, window_bounds = array<i64: 1, 32>}, {transform_indices = @transform_25, window_bounds = array<i64: 1, 1, 32>}]} {
    %c0 = arith.constant 0 : index
    %c0_0 = arith.constant 0 : index
    %c0_1 = arith.constant 0 : index
    %0 = vector.load %arg1[%c0, %c0_0, %c0_1] : memref<1x4x192xf32, #tpu.memory_space<vmem>>, vector<1x4x192xf32>
    %1 = vector.shape_cast %0 : vector<1x4x192xf32> to vector<4x192xf32>
    %c0_2 = arith.constant 0 : index
    %c0_3 = arith.constant 0 : index
    %2 = vector.load %arg2[%c0_2, %c0_3] : memref<192x32xf32, #tpu.memory_space<vmem>>, vector<192x32xf32>
    %cst = arith.constant dense<0.000000e+00> : vector<4x32xf32>
    %3 = tpu.matmul %1, %2, %cst {dimension_numbers = #tpu.dot_dimension_numbers<[1], [0], [0], [1], [0, 0, 1, 1], [], []>} : vector<4x192xf32>, vector<192x32xf32>, vector<4x32xf32> -> vector<4x32xf32>
    %c0_4 = arith.constant 0 : index
    %c0_5 = arith.constant 0 : index
    %4 = vector.load %arg3[%c0_4, %c0_5] : memref<1x32xf32, #tpu.memory_space<vmem>>, vector<1x32xf32>
    %5 = vector.broadcast %4 : vector<1x32xf32> to vector<4x32xf32>
    %6 = arith.addf %3, %5 : vector<4x32xf32>
    %c0_6 = arith.constant 0 : index
    %c0_7 = arith.constant 0 : index
    %7 = vector.load %arg4[%c0_6, %c0_7] : memref<1x32xf32, #tpu.memory_space<vmem>>, vector<1x32xf32>
    %8 = tpu.concatenate %7, %6 in 0 : vector<1x32xf32>, vector<4x32xf32> -> vector<5x32xf32>
    %c0_8 = arith.constant 0 : index
    %c0_9 = arith.constant 0 : index
    %9 = vector.load %arg5[%c0_8, %c0_9] : memref<5x32xf32, #tpu.memory_space<vmem>>, vector<5x32xf32>
    %10 = arith.addf %8, %9 : vector<5x32xf32>
    %c0_10 = arith.constant 0 : index
    %c0_11 = arith.constant 0 : index
    %c0_12 = arith.constant 0 : index
    %11 = vector.load %arg6[%c0_10, %c0_11, %c0_12] : memref<2x1x32xf32, #tpu.memory_space<vmem>>, vector<1x1x32xf32>
    %12 = vector.shape_cast %11 : vector<1x1x32xf32> to vector<1x32xf32>
    %c0_13 = arith.constant 0 : index
    %c0_14 = arith.constant 0 : index
    %c0_15 = arith.constant 0 : index
    %13 = vector.load %arg7[%c0_13, %c0_14, %c0_15] : memref<2x1x32xf32, #tpu.memory_space<vmem>>, vector<1x1x32xf32>
    %14 = vector.shape_cast %13 : vector<1x1x32xf32> to vector<1x32xf32>
    %cst_16 = arith.constant dense<0.000000e+00> : vector<5xf32>
    %15 = vector.multi_reduction <add>, %10, %cst_16 [1] : vector<5x32xf32> to vector<5xf32>
    %16 = vector.shape_cast %15 : vector<5xf32> to vector<5x1xf32>
    %cst_17 = arith.constant 3.200000e+01 : f32
    %17 = vector.broadcast %cst_17 : f32 to vector<5x1xf32>
    %18 = arith.divf %16, %17 : vector<5x1xf32>
    %19 = vector.broadcast %18 : vector<5x1xf32> to vector<5x32xf32>
    %20 = arith.subf %10, %19 : vector<5x32xf32>
    %21 = arith.mulf %20, %20 : vector<5x32xf32>
    %cst_18 = arith.constant dense<0.000000e+00> : vector<5xf32>
    %22 = vector.multi_reduction <add>, %21, %cst_18 [1] : vector<5x32xf32> to vector<5xf32>
    %23 = vector.shape_cast %22 : vector<5xf32> to vector<5x1xf32>
    %cst_19 = arith.constant 3.200000e+01 : f32
    %24 = vector.broadcast %cst_19 : f32 to vector<5x1xf32>
    %25 = arith.divf %23, %24 : vector<5x1xf32>
    %26 = vector.broadcast %18 : vector<5x1xf32> to vector<5x32xf32>
    %27 = arith.subf %10, %26 : vector<5x32xf32>
    %cst_20 = arith.constant 9.99999997E-7 : f32
    %28 = vector.broadcast %cst_20 : f32 to vector<5x1xf32>
    %29 = arith.addf %25, %28 : vector<5x1xf32>
    %30 = math.rsqrt %29 : vector<5x1xf32>
    %31 = vector.broadcast %30 : vector<5x1xf32> to vector<5x32xf32>
    %32 = arith.mulf %27, %31 : vector<5x32xf32>
    %33 = vector.broadcast %12 : vector<1x32xf32> to vector<5x32xf32>
    %34 = arith.mulf %32, %33 : vector<5x32xf32>
    %35 = vector.broadcast %14 : vector<1x32xf32> to vector<5x32xf32>
    %36 = arith.addf %34, %35 : vector<5x32xf32>
    %cst_21 = arith.constant 0.000000e+00 : f32
    %37 = vector.broadcast %cst_21 : f32 to vector<5x32xf32>
    %c0_22 = arith.constant 0 : index
    %c0_23 = arith.constant 0 : index
    %c0_24 = arith.constant 0 : index
    %c0_25 = arith.constant 0 : index
    %38 = vector.load %arg8[%c0_22, %c0_23, %c0_24, %c0_25] : memref<2x2x32x16xf32, #tpu.memory_space<vmem>>, vector<1x1x32x16xf32>
    %39 = vector.shape_cast %38 : vector<1x1x32x16xf32> to vector<32x16xf32>
    %cst_26 = arith.constant dense<0.000000e+00> : vector<5x16xf32>
    %40 = tpu.matmul %36, %39, %cst_26 {dimension_numbers = #tpu.dot_dimension_numbers<[1], [0], [0], [1], [0, 0, 1, 1], [], []>} : vector<5x32xf32>, vector<32x16xf32>, vector<5x16xf32> -> vector<5x16xf32>
    %c0_27 = arith.constant 0 : index
    %c0_28 = arith.constant 0 : index
    %c0_29 = arith.constant 0 : index
    %c0_30 = arith.constant 0 : index
    %41 = vector.load %arg9[%c0_27, %c0_28, %c0_29, %c0_30] : memref<2x2x1x16xf32, #tpu.memory_space<vmem>>, vector<1x1x1x16xf32>
    %42 = vector.shape_cast %41 : vector<1x1x1x16xf32> to vector<1x16xf32>
    %43 = vector.broadcast %42 : vector<1x16xf32> to vector<5x16xf32>
    %44 = arith.addf %40, %43 : vector<5x16xf32>
    %c0_31 = arith.constant 0 : index
    %c0_32 = arith.constant 0 : index
    %c0_33 = arith.constant 0 : index
    %c0_34 = arith.constant 0 : index
    %45 = vector.load %arg10[%c0_31, %c0_32, %c0_33, %c0_34] : memref<2x2x32x16xf32, #tpu.memory_space<vmem>>, vector<1x1x32x16xf32>
    %46 = vector.shape_cast %45 : vector<1x1x32x16xf32> to vector<32x16xf32>
    %cst_35 = arith.constant dense<0.000000e+00> : vector<5x16xf32>
    %47 = tpu.matmul %36, %46, %cst_35 {dimension_numbers = #tpu.dot_dimension_numbers<[1], [0], [0], [1], [0, 0, 1, 1], [], []>} : vector<5x32xf32>, vector<32x16xf32>, vector<5x16xf32> -> vector<5x16xf32>
    %c0_36 = arith.constant 0 : index
    %c0_37 = arith.constant 0 : index
    %c0_38 = arith.constant 0 : index
    %c0_39 = arith.constant 0 : index
    %48 = vector.load %arg11[%c0_36, %c0_37, %c0_38, %c0_39] : memref<2x2x1x16xf32, #tpu.memory_space<vmem>>, vector<1x1x1x16xf32>
    %49 = vector.shape_cast %48 : vector<1x1x1x16xf32> to vector<1x16xf32>
    %50 = vector.broadcast %49 : vector<1x16xf32> to vector<5x16xf32>
    %51 = arith.addf %47, %50 : vector<5x16xf32>
    %c0_40 = arith.constant 0 : index
    %c0_41 = arith.constant 0 : index
    %c0_42 = arith.constant 0 : index
    %c0_43 = arith.constant 0 : index
    %52 = vector.load %arg12[%c0_40, %c0_41, %c0_42, %c0_43] : memref<2x2x32x16xf32, #tpu.memory_space<vmem>>, vector<1x1x32x16xf32>
    %53 = vector.shape_cast %52 : vector<1x1x32x16xf32> to vector<32x16xf32>
    %cst_44 = arith.constant dense<0.000000e+00> : vector<5x16xf32>
    %54 = tpu.matmul %36, %53, %cst_44 {dimension_numbers = #tpu.dot_dimension_numbers<[1], [0], [0], [1], [0, 0, 1, 1], [], []>} : vector<5x32xf32>, vector<32x16xf32>, vector<5x16xf32> -> vector<5x16xf32>
    %c0_45 = arith.constant 0 : index
    %c0_46 = arith.constant 0 : index
    %c0_47 = arith.constant 0 : index
    %c0_48 = arith.constant 0 : index
    %55 = vector.load %arg13[%c0_45, %c0_46, %c0_47, %c0_48] : memref<2x2x1x16xf32, #tpu.memory_space<vmem>>, vector<1x1x1x16xf32>
    %56 = vector.shape_cast %55 : vector<1x1x1x16xf32> to vector<1x16xf32>
    %57 = vector.broadcast %56 : vector<1x16xf32> to vector<5x16xf32>
    %58 = arith.addf %54, %57 : vector<5x16xf32>
    %cst_49 = arith.constant 2.500000e-01 : f32
    %59 = vector.broadcast %cst_49 : f32 to vector<5x16xf32>
    %60 = arith.mulf %44, %59 : vector<5x16xf32>
    %cst_50 = arith.constant dense<0.000000e+00> : vector<5x5xf32>
    %61 = tpu.matmul %60, %51, %cst_50 {dimension_numbers = #tpu.dot_dimension_numbers<[1], [1], [0], [0], [0, 0, 1, 0], [], []>} : vector<5x16xf32>, vector<5x16xf32>, vector<5x5xf32> -> vector<5x5xf32>
    %cst_51 = arith.constant dense<0xFF800000> : vector<5xf32>
    %62 = vector.multi_reduction <maximumf>, %61, %cst_51 [1] : vector<5x5xf32> to vector<5xf32>
    %63 = vector.shape_cast %62 : vector<5xf32> to vector<5x1xf32>
    %64 = vector.broadcast %63 : vector<5x1xf32> to vector<5x5xf32>
    %65 = arith.subf %61, %64 : vector<5x5xf32>
    %66 = math.exp %65 : vector<5x5xf32>
    %cst_52 = arith.constant dense<0.000000e+00> : vector<5xf32>
    %67 = vector.multi_reduction <add>, %66, %cst_52 [1] : vector<5x5xf32> to vector<5xf32>
    %68 = vector.shape_cast %67 : vector<5xf32> to vector<5x1xf32>
    %69 = tpu.reciprocal %68 {approx = true} : vector<5x1xf32> -> vector<5x1xf32>
    %70 = vector.broadcast %69 : vector<5x1xf32> to vector<5x5xf32>
    %71 = arith.mulf %66, %70 : vector<5x5xf32>
    %cst_53 = arith.constant dense<0.000000e+00> : vector<5x16xf32>
    %72 = tpu.matmul %71, %58, %cst_53 {dimension_numbers = #tpu.dot_dimension_numbers<[1], [0], [0], [1], [0, 0, 1, 1], [], []>} : vector<5x5xf32>, vector<5x16xf32>, vector<5x16xf32> -> vector<5x16xf32>
    %c0_54 = arith.constant 0 : index
    %c0_55 = arith.constant 0 : index
    %c0_56 = arith.constant 0 : index
    %c0_57 = arith.constant 0 : index
    %73 = vector.load %arg14[%c0_54, %c0_55, %c0_56, %c0_57] : memref<2x2x16x32xf32, #tpu.memory_space<vmem>>, vector<1x1x16x32xf32>
    %74 = vector.shape_cast %73 : vector<1x1x16x32xf32> to vector<16x32xf32>
    %cst_58 = arith.constant dense<0.000000e+00> : vector<5x32xf32>
    %75 = tpu.matmul %72, %74, %cst_58 {dimension_numbers = #tpu.dot_dimension_numbers<[1], [0], [0], [1], [0, 0, 1, 1], [], []>} : vector<5x16xf32>, vector<16x32xf32>, vector<5x32xf32> -> vector<5x32xf32>
    %76 = arith.addf %37, %75 : vector<5x32xf32>
    %c0_59 = arith.constant 0 : index
    %c1 = arith.constant 1 : index
    %c0_60 = arith.constant 0 : index
    %c0_61 = arith.constant 0 : index
    %77 = vector.load %arg8[%c0_59, %c1, %c0_60, %c0_61] : memref<2x2x32x16xf32, #tpu.memory_space<vmem>>, vector<1x1x32x16xf32>
    %78 = vector.shape_cast %77 : vector<1x1x32x16xf32> to vector<32x16xf32>
    %cst_62 = arith.constant dense<0.000000e+00> : vector<5x16xf32>
    %79 = tpu.matmul %36, %78, %cst_62 {dimension_numbers = #tpu.dot_dimension_numbers<[1], [0], [0], [1], [0, 0, 1, 1], [], []>} : vector<5x32xf32>, vector<32x16xf32>, vector<5x16xf32> -> vector<5x16xf32>
    %c0_63 = arith.constant 0 : index
    %c1_64 = arith.constant 1 : index
    %c0_65 = arith.constant 0 : index
    %c0_66 = arith.constant 0 : index
    %80 = vector.load %arg9[%c0_63, %c1_64, %c0_65, %c0_66] : memref<2x2x1x16xf32, #tpu.memory_space<vmem>>, vector<1x1x1x16xf32>
    %81 = vector.shape_cast %80 : vector<1x1x1x16xf32> to vector<1x16xf32>
    %82 = vector.broadcast %81 : vector<1x16xf32> to vector<5x16xf32>
    %83 = arith.addf %79, %82 : vector<5x16xf32>
    %c0_67 = arith.constant 0 : index
    %c1_68 = arith.constant 1 : index
    %c0_69 = arith.constant 0 : index
    %c0_70 = arith.constant 0 : index
    %84 = vector.load %arg10[%c0_67, %c1_68, %c0_69, %c0_70] : memref<2x2x32x16xf32, #tpu.memory_space<vmem>>, vector<1x1x32x16xf32>
    %85 = vector.shape_cast %84 : vector<1x1x32x16xf32> to vector<32x16xf32>
    %cst_71 = arith.constant dense<0.000000e+00> : vector<5x16xf32>
    %86 = tpu.matmul %36, %85, %cst_71 {dimension_numbers = #tpu.dot_dimension_numbers<[1], [0], [0], [1], [0, 0, 1, 1], [], []>} : vector<5x32xf32>, vector<32x16xf32>, vector<5x16xf32> -> vector<5x16xf32>
    %c0_72 = arith.constant 0 : index
    %c1_73 = arith.constant 1 : index
    %c0_74 = arith.constant 0 : index
    %c0_75 = arith.constant 0 : index
    %87 = vector.load %arg11[%c0_72, %c1_73, %c0_74, %c0_75] : memref<2x2x1x16xf32, #tpu.memory_space<vmem>>, vector<1x1x1x16xf32>
    %88 = vector.shape_cast %87 : vector<1x1x1x16xf32> to vector<1x16xf32>
    %89 = vector.broadcast %88 : vector<1x16xf32> to vector<5x16xf32>
    %90 = arith.addf %86, %89 : vector<5x16xf32>
    %c0_76 = arith.constant 0 : index
    %c1_77 = arith.constant 1 : index
    %c0_78 = arith.constant 0 : index
    %c0_79 = arith.constant 0 : index
    %91 = vector.load %arg12[%c0_76, %c1_77, %c0_78, %c0_79] : memref<2x2x32x16xf32, #tpu.memory_space<vmem>>, vector<1x1x32x16xf32>
    %92 = vector.shape_cast %91 : vector<1x1x32x16xf32> to vector<32x16xf32>
    %cst_80 = arith.constant dense<0.000000e+00> : vector<5x16xf32>
    %93 = tpu.matmul %36, %92, %cst_80 {dimension_numbers = #tpu.dot_dimension_numbers<[1], [0], [0], [1], [0, 0, 1, 1], [], []>} : vector<5x32xf32>, vector<32x16xf32>, vector<5x16xf32> -> vector<5x16xf32>
    %c0_81 = arith.constant 0 : index
    %c1_82 = arith.constant 1 : index
    %c0_83 = arith.constant 0 : index
    %c0_84 = arith.constant 0 : index
    %94 = vector.load %arg13[%c0_81, %c1_82, %c0_83, %c0_84] : memref<2x2x1x16xf32, #tpu.memory_space<vmem>>, vector<1x1x1x16xf32>
    %95 = vector.shape_cast %94 : vector<1x1x1x16xf32> to vector<1x16xf32>
    %96 = vector.broadcast %95 : vector<1x16xf32> to vector<5x16xf32>
    %97 = arith.addf %93, %96 : vector<5x16xf32>
    %cst_85 = arith.constant 2.500000e-01 : f32
    %98 = vector.broadcast %cst_85 : f32 to vector<5x16xf32>
    %99 = arith.mulf %83, %98 : vector<5x16xf32>
    %cst_86 = arith.constant dense<0.000000e+00> : vector<5x5xf32>
    %100 = tpu.matmul %99, %90, %cst_86 {dimension_numbers = #tpu.dot_dimension_numbers<[1], [1], [0], [0], [0, 0, 1, 0], [], []>} : vector<5x16xf32>, vector<5x16xf32>, vector<5x5xf32> -> vector<5x5xf32>
    %cst_87 = arith.constant dense<0xFF800000> : vector<5xf32>
    %101 = vector.multi_reduction <maximumf>, %100, %cst_87 [1] : vector<5x5xf32> to vector<5xf32>
    %102 = vector.shape_cast %101 : vector<5xf32> to vector<5x1xf32>
    %103 = vector.broadcast %102 : vector<5x1xf32> to vector<5x5xf32>
    %104 = arith.subf %100, %103 : vector<5x5xf32>
    %105 = math.exp %104 : vector<5x5xf32>
    %cst_88 = arith.constant dense<0.000000e+00> : vector<5xf32>
    %106 = vector.multi_reduction <add>, %105, %cst_88 [1] : vector<5x5xf32> to vector<5xf32>
    %107 = vector.shape_cast %106 : vector<5xf32> to vector<5x1xf32>
    %108 = tpu.reciprocal %107 {approx = true} : vector<5x1xf32> -> vector<5x1xf32>
    %109 = vector.broadcast %108 : vector<5x1xf32> to vector<5x5xf32>
    %110 = arith.mulf %105, %109 : vector<5x5xf32>
    %cst_89 = arith.constant dense<0.000000e+00> : vector<5x16xf32>
    %111 = tpu.matmul %110, %97, %cst_89 {dimension_numbers = #tpu.dot_dimension_numbers<[1], [0], [0], [1], [0, 0, 1, 1], [], []>} : vector<5x5xf32>, vector<5x16xf32>, vector<5x16xf32> -> vector<5x16xf32>
    %c0_90 = arith.constant 0 : index
    %c1_91 = arith.constant 1 : index
    %c0_92 = arith.constant 0 : index
    %c0_93 = arith.constant 0 : index
    %112 = vector.load %arg14[%c0_90, %c1_91, %c0_92, %c0_93] : memref<2x2x16x32xf32, #tpu.memory_space<vmem>>, vector<1x1x16x32xf32>
    %113 = vector.shape_cast %112 : vector<1x1x16x32xf32> to vector<16x32xf32>
    %cst_94 = arith.constant dense<0.000000e+00> : vector<5x32xf32>
    %114 = tpu.matmul %111, %113, %cst_94 {dimension_numbers = #tpu.dot_dimension_numbers<[1], [0], [0], [1], [0, 0, 1, 1], [], []>} : vector<5x16xf32>, vector<16x32xf32>, vector<5x32xf32> -> vector<5x32xf32>
    %115 = arith.addf %76, %114 : vector<5x32xf32>
    %c0_95 = arith.constant 0 : index
    %c0_96 = arith.constant 0 : index
    %c0_97 = arith.constant 0 : index
    %116 = vector.load %arg15[%c0_95, %c0_96, %c0_97] : memref<2x1x32xf32, #tpu.memory_space<vmem>>, vector<1x1x32xf32>
    %117 = vector.shape_cast %116 : vector<1x1x32xf32> to vector<1x32xf32>
    %118 = vector.broadcast %117 : vector<1x32xf32> to vector<5x32xf32>
    %119 = arith.addf %115, %118 : vector<5x32xf32>
    %c0_98 = arith.constant 0 : index
    %c0_99 = arith.constant 0 : index
    %c0_100 = arith.constant 0 : index
    %120 = vector.load %arg16[%c0_98, %c0_99, %c0_100] : memref<2x1x32xf32, #tpu.memory_space<vmem>>, vector<1x1x32xf32>
    %121 = vector.shape_cast %120 : vector<1x1x32xf32> to vector<1x32xf32>
    %122 = vector.broadcast %121 : vector<1x32xf32> to vector<5x32xf32>
    %123 = arith.mulf %122, %119 : vector<5x32xf32>
    %124 = arith.addf %10, %123 : vector<5x32xf32>
    %c0_101 = arith.constant 0 : index
    %c0_102 = arith.constant 0 : index
    %c0_103 = arith.constant 0 : index
    %125 = vector.load %arg17[%c0_101, %c0_102, %c0_103] : memref<2x1x32xf32, #tpu.memory_space<vmem>>, vector<1x1x32xf32>
    %126 = vector.shape_cast %125 : vector<1x1x32xf32> to vector<1x32xf32>
    %c0_104 = arith.constant 0 : index
    %c0_105 = arith.constant 0 : index
    %c0_106 = arith.constant 0 : index
    %127 = vector.load %arg18[%c0_104, %c0_105, %c0_106] : memref<2x1x32xf32, #tpu.memory_space<vmem>>, vector<1x1x32xf32>
    %128 = vector.shape_cast %127 : vector<1x1x32xf32> to vector<1x32xf32>
    %cst_107 = arith.constant dense<0.000000e+00> : vector<5xf32>
    %129 = vector.multi_reduction <add>, %124, %cst_107 [1] : vector<5x32xf32> to vector<5xf32>
    %130 = vector.shape_cast %129 : vector<5xf32> to vector<5x1xf32>
    %cst_108 = arith.constant 3.200000e+01 : f32
    %131 = vector.broadcast %cst_108 : f32 to vector<5x1xf32>
    %132 = arith.divf %130, %131 : vector<5x1xf32>
    %133 = vector.broadcast %132 : vector<5x1xf32> to vector<5x32xf32>
    %134 = arith.subf %124, %133 : vector<5x32xf32>
    %135 = arith.mulf %134, %134 : vector<5x32xf32>
    %cst_109 = arith.constant dense<0.000000e+00> : vector<5xf32>
    %136 = vector.multi_reduction <add>, %135, %cst_109 [1] : vector<5x32xf32> to vector<5xf32>
    %137 = vector.shape_cast %136 : vector<5xf32> to vector<5x1xf32>
    %cst_110 = arith.constant 3.200000e+01 : f32
    %138 = vector.broadcast %cst_110 : f32 to vector<5x1xf32>
    %139 = arith.divf %137, %138 : vector<5x1xf32>
    %140 = vector.broadcast %132 : vector<5x1xf32> to vector<5x32xf32>
    %141 = arith.subf %124, %140 : vector<5x32xf32>
    %cst_111 = arith.constant 9.99999997E-7 : f32
    %142 = vector.broadcast %cst_111 : f32 to vector<5x1xf32>
    %143 = arith.addf %139, %142 : vector<5x1xf32>
    %144 = math.rsqrt %143 : vector<5x1xf32>
    %145 = vector.broadcast %144 : vector<5x1xf32> to vector<5x32xf32>
    %146 = arith.mulf %141, %145 : vector<5x32xf32>
    %147 = vector.broadcast %126 : vector<1x32xf32> to vector<5x32xf32>
    %148 = arith.mulf %146, %147 : vector<5x32xf32>
    %149 = vector.broadcast %128 : vector<1x32xf32> to vector<5x32xf32>
    %150 = arith.addf %148, %149 : vector<5x32xf32>
    %c0_112 = arith.constant 0 : index
    %c0_113 = arith.constant 0 : index
    %c0_114 = arith.constant 0 : index
    %151 = vector.load %arg19[%c0_112, %c0_113, %c0_114] : memref<2x32x128xf32, #tpu.memory_space<vmem>>, vector<1x32x128xf32>
    %152 = vector.shape_cast %151 : vector<1x32x128xf32> to vector<32x128xf32>
    %cst_115 = arith.constant dense<0.000000e+00> : vector<5x128xf32>
    %153 = tpu.matmul %150, %152, %cst_115 {dimension_numbers = #tpu.dot_dimension_numbers<[1], [0], [0], [1], [0, 0, 1, 1], [], []>} : vector<5x32xf32>, vector<32x128xf32>, vector<5x128xf32> -> vector<5x128xf32>
    %c0_116 = arith.constant 0 : index
    %c0_117 = arith.constant 0 : index
    %c0_118 = arith.constant 0 : index
    %154 = vector.load %arg20[%c0_116, %c0_117, %c0_118] : memref<2x1x128xf32, #tpu.memory_space<vmem>>, vector<1x1x128xf32>
    %155 = vector.shape_cast %154 : vector<1x1x128xf32> to vector<1x128xf32>
    %156 = vector.broadcast %155 : vector<1x128xf32> to vector<5x128xf32>
    %157 = arith.addf %153, %156 : vector<5x128xf32>
    %cst_119 = arith.constant 5.000000e-01 : f32
    %158 = vector.broadcast %cst_119 : f32 to vector<5x128xf32>
    %159 = arith.mulf %158, %157 : vector<5x128xf32>
    %cst_120 = arith.constant 0.707106769 : f32
    %160 = vector.broadcast %cst_120 : f32 to vector<5x128xf32>
    %161 = arith.mulf %157, %160 : vector<5x128xf32>
    %162 = math.erf %161 : vector<5x128xf32>
    %cst_121 = arith.constant 1.000000e+00 : f32
    %163 = vector.broadcast %cst_121 : f32 to vector<5x128xf32>
    %164 = arith.addf %163, %162 : vector<5x128xf32>
    %165 = arith.mulf %159, %164 : vector<5x128xf32>
    %c0_122 = arith.constant 0 : index
    %c0_123 = arith.constant 0 : index
    %c0_124 = arith.constant 0 : index
    %166 = vector.load %arg21[%c0_122, %c0_123, %c0_124] : memref<2x128x32xf32, #tpu.memory_space<vmem>>, vector<1x128x32xf32>
    %167 = vector.shape_cast %166 : vector<1x128x32xf32> to vector<128x32xf32>
    %cst_125 = arith.constant dense<0.000000e+00> : vector<5x32xf32>
    %168 = tpu.matmul %165, %167, %cst_125 {dimension_numbers = #tpu.dot_dimension_numbers<[1], [0], [0], [1], [0, 0, 1, 1], [], []>} : vector<5x128xf32>, vector<128x32xf32>, vector<5x32xf32> -> vector<5x32xf32>
    %c0_126 = arith.constant 0 : index
    %c0_127 = arith.constant 0 : index
    %c0_128 = arith.constant 0 : index
    %169 = vector.load %arg22[%c0_126, %c0_127, %c0_128] : memref<2x1x32xf32, #tpu.memory_space<vmem>>, vector<1x1x32xf32>
    %170 = vector.shape_cast %169 : vector<1x1x32xf32> to vector<1x32xf32>
    %171 = vector.broadcast %170 : vector<1x32xf32> to vector<5x32xf32>
    %172 = arith.addf %168, %171 : vector<5x32xf32>
    %c0_129 = arith.constant 0 : index
    %c0_130 = arith.constant 0 : index
    %c0_131 = arith.constant 0 : index
    %173 = vector.load %arg23[%c0_129, %c0_130, %c0_131] : memref<2x1x32xf32, #tpu.memory_space<vmem>>, vector<1x1x32xf32>
    %174 = vector.shape_cast %173 : vector<1x1x32xf32> to vector<1x32xf32>
    %175 = vector.broadcast %174 : vector<1x32xf32> to vector<5x32xf32>
    %176 = arith.mulf %175, %172 : vector<5x32xf32>
    %177 = arith.addf %124, %176 : vector<5x32xf32>
    %c1_132 = arith.constant 1 : index
    %c0_133 = arith.constant 0 : index
    %c0_134 = arith.constant 0 : index
    %178 = vector.load %arg6[%c1_132, %c0_133, %c0_134] : memref<2x1x32xf32, #tpu.memory_space<vmem>>, vector<1x1x32xf32>
    %179 = vector.shape_cast %178 : vector<1x1x32xf32> to vector<1x32xf32>
    %c1_135 = arith.constant 1 : index
    %c0_136 = arith.constant 0 : index
    %c0_137 = arith.constant 0 : index
    %180 = vector.load %arg7[%c1_135, %c0_136, %c0_137] : memref<2x1x32xf32, #tpu.memory_space<vmem>>, vector<1x1x32xf32>
    %181 = vector.shape_cast %180 : vector<1x1x32xf32> to vector<1x32xf32>
    %cst_138 = arith.constant dense<0.000000e+00> : vector<5xf32>
    %182 = vector.multi_reduction <add>, %177, %cst_138 [1] : vector<5x32xf32> to vector<5xf32>
    %183 = vector.shape_cast %182 : vector<5xf32> to vector<5x1xf32>
    %cst_139 = arith.constant 3.200000e+01 : f32
    %184 = vector.broadcast %cst_139 : f32 to vector<5x1xf32>
    %185 = arith.divf %183, %184 : vector<5x1xf32>
    %186 = vector.broadcast %185 : vector<5x1xf32> to vector<5x32xf32>
    %187 = arith.subf %177, %186 : vector<5x32xf32>
    %188 = arith.mulf %187, %187 : vector<5x32xf32>
    %cst_140 = arith.constant dense<0.000000e+00> : vector<5xf32>
    %189 = vector.multi_reduction <add>, %188, %cst_140 [1] : vector<5x32xf32> to vector<5xf32>
    %190 = vector.shape_cast %189 : vector<5xf32> to vector<5x1xf32>
    %cst_141 = arith.constant 3.200000e+01 : f32
    %191 = vector.broadcast %cst_141 : f32 to vector<5x1xf32>
    %192 = arith.divf %190, %191 : vector<5x1xf32>
    %193 = vector.broadcast %185 : vector<5x1xf32> to vector<5x32xf32>
    %194 = arith.subf %177, %193 : vector<5x32xf32>
    %cst_142 = arith.constant 9.99999997E-7 : f32
    %195 = vector.broadcast %cst_142 : f32 to vector<5x1xf32>
    %196 = arith.addf %192, %195 : vector<5x1xf32>
    %197 = math.rsqrt %196 : vector<5x1xf32>
    %198 = vector.broadcast %197 : vector<5x1xf32> to vector<5x32xf32>
    %199 = arith.mulf %194, %198 : vector<5x32xf32>
    %200 = vector.broadcast %179 : vector<1x32xf32> to vector<5x32xf32>
    %201 = arith.mulf %199, %200 : vector<5x32xf32>
    %202 = vector.broadcast %181 : vector<1x32xf32> to vector<5x32xf32>
    %203 = arith.addf %201, %202 : vector<5x32xf32>
    %cst_143 = arith.constant 0.000000e+00 : f32
    %204 = vector.broadcast %cst_143 : f32 to vector<5x32xf32>
    %c1_144 = arith.constant 1 : index
    %c0_145 = arith.constant 0 : index
    %c0_146 = arith.constant 0 : index
    %c0_147 = arith.constant 0 : index
    %205 = vector.load %arg8[%c1_144, %c0_145, %c0_146, %c0_147] : memref<2x2x32x16xf32, #tpu.memory_space<vmem>>, vector<1x1x32x16xf32>
    %206 = vector.shape_cast %205 : vector<1x1x32x16xf32> to vector<32x16xf32>
    %cst_148 = arith.constant dense<0.000000e+00> : vector<5x16xf32>
    %207 = tpu.matmul %203, %206, %cst_148 {dimension_numbers = #tpu.dot_dimension_numbers<[1], [0], [0], [1], [0, 0, 1, 1], [], []>} : vector<5x32xf32>, vector<32x16xf32>, vector<5x16xf32> -> vector<5x16xf32>
    %c1_149 = arith.constant 1 : index
    %c0_150 = arith.constant 0 : index
    %c0_151 = arith.constant 0 : index
    %c0_152 = arith.constant 0 : index
    %208 = vector.load %arg9[%c1_149, %c0_150, %c0_151, %c0_152] : memref<2x2x1x16xf32, #tpu.memory_space<vmem>>, vector<1x1x1x16xf32>
    %209 = vector.shape_cast %208 : vector<1x1x1x16xf32> to vector<1x16xf32>
    %210 = vector.broadcast %209 : vector<1x16xf32> to vector<5x16xf32>
    %211 = arith.addf %207, %210 : vector<5x16xf32>
    %c1_153 = arith.constant 1 : index
    %c0_154 = arith.constant 0 : index
    %c0_155 = arith.constant 0 : index
    %c0_156 = arith.constant 0 : index
    %212 = vector.load %arg10[%c1_153, %c0_154, %c0_155, %c0_156] : memref<2x2x32x16xf32, #tpu.memory_space<vmem>>, vector<1x1x32x16xf32>
    %213 = vector.shape_cast %212 : vector<1x1x32x16xf32> to vector<32x16xf32>
    %cst_157 = arith.constant dense<0.000000e+00> : vector<5x16xf32>
    %214 = tpu.matmul %203, %213, %cst_157 {dimension_numbers = #tpu.dot_dimension_numbers<[1], [0], [0], [1], [0, 0, 1, 1], [], []>} : vector<5x32xf32>, vector<32x16xf32>, vector<5x16xf32> -> vector<5x16xf32>
    %c1_158 = arith.constant 1 : index
    %c0_159 = arith.constant 0 : index
    %c0_160 = arith.constant 0 : index
    %c0_161 = arith.constant 0 : index
    %215 = vector.load %arg11[%c1_158, %c0_159, %c0_160, %c0_161] : memref<2x2x1x16xf32, #tpu.memory_space<vmem>>, vector<1x1x1x16xf32>
    %216 = vector.shape_cast %215 : vector<1x1x1x16xf32> to vector<1x16xf32>
    %217 = vector.broadcast %216 : vector<1x16xf32> to vector<5x16xf32>
    %218 = arith.addf %214, %217 : vector<5x16xf32>
    %c1_162 = arith.constant 1 : index
    %c0_163 = arith.constant 0 : index
    %c0_164 = arith.constant 0 : index
    %c0_165 = arith.constant 0 : index
    %219 = vector.load %arg12[%c1_162, %c0_163, %c0_164, %c0_165] : memref<2x2x32x16xf32, #tpu.memory_space<vmem>>, vector<1x1x32x16xf32>
    %220 = vector.shape_cast %219 : vector<1x1x32x16xf32> to vector<32x16xf32>
    %cst_166 = arith.constant dense<0.000000e+00> : vector<5x16xf32>
    %221 = tpu.matmul %203, %220, %cst_166 {dimension_numbers = #tpu.dot_dimension_numbers<[1], [0], [0], [1], [0, 0, 1, 1], [], []>} : vector<5x32xf32>, vector<32x16xf32>, vector<5x16xf32> -> vector<5x16xf32>
    %c1_167 = arith.constant 1 : index
    %c0_168 = arith.constant 0 : index
    %c0_169 = arith.constant 0 : index
    %c0_170 = arith.constant 0 : index
    %222 = vector.load %arg13[%c1_167, %c0_168, %c0_169, %c0_170] : memref<2x2x1x16xf32, #tpu.memory_space<vmem>>, vector<1x1x1x16xf32>
    %223 = vector.shape_cast %222 : vector<1x1x1x16xf32> to vector<1x16xf32>
    %224 = vector.broadcast %223 : vector<1x16xf32> to vector<5x16xf32>
    %225 = arith.addf %221, %224 : vector<5x16xf32>
    %cst_171 = arith.constant 2.500000e-01 : f32
    %226 = vector.broadcast %cst_171 : f32 to vector<5x16xf32>
    %227 = arith.mulf %211, %226 : vector<5x16xf32>
    %cst_172 = arith.constant dense<0.000000e+00> : vector<5x5xf32>
    %228 = tpu.matmul %227, %218, %cst_172 {dimension_numbers = #tpu.dot_dimension_numbers<[1], [1], [0], [0], [0, 0, 1, 0], [], []>} : vector<5x16xf32>, vector<5x16xf32>, vector<5x5xf32> -> vector<5x5xf32>
    %cst_173 = arith.constant dense<0xFF800000> : vector<5xf32>
    %229 = vector.multi_reduction <maximumf>, %228, %cst_173 [1] : vector<5x5xf32> to vector<5xf32>
    %230 = vector.shape_cast %229 : vector<5xf32> to vector<5x1xf32>
    %231 = vector.broadcast %230 : vector<5x1xf32> to vector<5x5xf32>
    %232 = arith.subf %228, %231 : vector<5x5xf32>
    %233 = math.exp %232 : vector<5x5xf32>
    %cst_174 = arith.constant dense<0.000000e+00> : vector<5xf32>
    %234 = vector.multi_reduction <add>, %233, %cst_174 [1] : vector<5x5xf32> to vector<5xf32>
    %235 = vector.shape_cast %234 : vector<5xf32> to vector<5x1xf32>
    %236 = tpu.reciprocal %235 {approx = true} : vector<5x1xf32> -> vector<5x1xf32>
    %237 = vector.broadcast %236 : vector<5x1xf32> to vector<5x5xf32>
    %238 = arith.mulf %233, %237 : vector<5x5xf32>
    %cst_175 = arith.constant dense<0.000000e+00> : vector<5x16xf32>
    %239 = tpu.matmul %238, %225, %cst_175 {dimension_numbers = #tpu.dot_dimension_numbers<[1], [0], [0], [1], [0, 0, 1, 1], [], []>} : vector<5x5xf32>, vector<5x16xf32>, vector<5x16xf32> -> vector<5x16xf32>
    %c1_176 = arith.constant 1 : index
    %c0_177 = arith.constant 0 : index
    %c0_178 = arith.constant 0 : index
    %c0_179 = arith.constant 0 : index
    %240 = vector.load %arg14[%c1_176, %c0_177, %c0_178, %c0_179] : memref<2x2x16x32xf32, #tpu.memory_space<vmem>>, vector<1x1x16x32xf32>
    %241 = vector.shape_cast %240 : vector<1x1x16x32xf32> to vector<16x32xf32>
    %cst_180 = arith.constant dense<0.000000e+00> : vector<5x32xf32>
    %242 = tpu.matmul %239, %241, %cst_180 {dimension_numbers = #tpu.dot_dimension_numbers<[1], [0], [0], [1], [0, 0, 1, 1], [], []>} : vector<5x16xf32>, vector<16x32xf32>, vector<5x32xf32> -> vector<5x32xf32>
    %243 = arith.addf %204, %242 : vector<5x32xf32>
    %c1_181 = arith.constant 1 : index
    %c1_182 = arith.constant 1 : index
    %c0_183 = arith.constant 0 : index
    %c0_184 = arith.constant 0 : index
    %244 = vector.load %arg8[%c1_181, %c1_182, %c0_183, %c0_184] : memref<2x2x32x16xf32, #tpu.memory_space<vmem>>, vector<1x1x32x16xf32>
    %245 = vector.shape_cast %244 : vector<1x1x32x16xf32> to vector<32x16xf32>
    %cst_185 = arith.constant dense<0.000000e+00> : vector<5x16xf32>
    %246 = tpu.matmul %203, %245, %cst_185 {dimension_numbers = #tpu.dot_dimension_numbers<[1], [0], [0], [1], [0, 0, 1, 1], [], []>} : vector<5x32xf32>, vector<32x16xf32>, vector<5x16xf32> -> vector<5x16xf32>
    %c1_186 = arith.constant 1 : index
    %c1_187 = arith.constant 1 : index
    %c0_188 = arith.constant 0 : index
    %c0_189 = arith.constant 0 : index
    %247 = vector.load %arg9[%c1_186, %c1_187, %c0_188, %c0_189] : memref<2x2x1x16xf32, #tpu.memory_space<vmem>>, vector<1x1x1x16xf32>
    %248 = vector.shape_cast %247 : vector<1x1x1x16xf32> to vector<1x16xf32>
    %249 = vector.broadcast %248 : vector<1x16xf32> to vector<5x16xf32>
    %250 = arith.addf %246, %249 : vector<5x16xf32>
    %c1_190 = arith.constant 1 : index
    %c1_191 = arith.constant 1 : index
    %c0_192 = arith.constant 0 : index
    %c0_193 = arith.constant 0 : index
    %251 = vector.load %arg10[%c1_190, %c1_191, %c0_192, %c0_193] : memref<2x2x32x16xf32, #tpu.memory_space<vmem>>, vector<1x1x32x16xf32>
    %252 = vector.shape_cast %251 : vector<1x1x32x16xf32> to vector<32x16xf32>
    %cst_194 = arith.constant dense<0.000000e+00> : vector<5x16xf32>
    %253 = tpu.matmul %203, %252, %cst_194 {dimension_numbers = #tpu.dot_dimension_numbers<[1], [0], [0], [1], [0, 0, 1, 1], [], []>} : vector<5x32xf32>, vector<32x16xf32>, vector<5x16xf32> -> vector<5x16xf32>
    %c1_195 = arith.constant 1 : index
    %c1_196 = arith.constant 1 : index
    %c0_197 = arith.constant 0 : index
    %c0_198 = arith.constant 0 : index
    %254 = vector.load %arg11[%c1_195, %c1_196, %c0_197, %c0_198] : memref<2x2x1x16xf32, #tpu.memory_space<vmem>>, vector<1x1x1x16xf32>
    %255 = vector.shape_cast %254 : vector<1x1x1x16xf32> to vector<1x16xf32>
    %256 = vector.broadcast %255 : vector<1x16xf32> to vector<5x16xf32>
    %257 = arith.addf %253, %256 : vector<5x16xf32>
    %c1_199 = arith.constant 1 : index
    %c1_200 = arith.constant 1 : index
    %c0_201 = arith.constant 0 : index
    %c0_202 = arith.constant 0 : index
    %258 = vector.load %arg12[%c1_199, %c1_200, %c0_201, %c0_202] : memref<2x2x32x16xf32, #tpu.memory_space<vmem>>, vector<1x1x32x16xf32>
    %259 = vector.shape_cast %258 : vector<1x1x32x16xf32> to vector<32x16xf32>
    %cst_203 = arith.constant dense<0.000000e+00> : vector<5x16xf32>
    %260 = tpu.matmul %203, %259, %cst_203 {dimension_numbers = #tpu.dot_dimension_numbers<[1], [0], [0], [1], [0, 0, 1, 1], [], []>} : vector<5x32xf32>, vector<32x16xf32>, vector<5x16xf32> -> vector<5x16xf32>
    %c1_204 = arith.constant 1 : index
    %c1_205 = arith.constant 1 : index
    %c0_206 = arith.constant 0 : index
    %c0_207 = arith.constant 0 : index
    %261 = vector.load %arg13[%c1_204, %c1_205, %c0_206, %c0_207] : memref<2x2x1x16xf32, #tpu.memory_space<vmem>>, vector<1x1x1x16xf32>
    %262 = vector.shape_cast %261 : vector<1x1x1x16xf32> to vector<1x16xf32>
    %263 = vector.broadcast %262 : vector<1x16xf32> to vector<5x16xf32>
    %264 = arith.addf %260, %263 : vector<5x16xf32>
    %cst_208 = arith.constant 2.500000e-01 : f32
    %265 = vector.broadcast %cst_208 : f32 to vector<5x16xf32>
    %266 = arith.mulf %250, %265 : vector<5x16xf32>
    %cst_209 = arith.constant dense<0.000000e+00> : vector<5x5xf32>
    %267 = tpu.matmul %266, %257, %cst_209 {dimension_numbers = #tpu.dot_dimension_numbers<[1], [1], [0], [0], [0, 0, 1, 0], [], []>} : vector<5x16xf32>, vector<5x16xf32>, vector<5x5xf32> -> vector<5x5xf32>
    %cst_210 = arith.constant dense<0xFF800000> : vector<5xf32>
    %268 = vector.multi_reduction <maximumf>, %267, %cst_210 [1] : vector<5x5xf32> to vector<5xf32>
    %269 = vector.shape_cast %268 : vector<5xf32> to vector<5x1xf32>
    %270 = vector.broadcast %269 : vector<5x1xf32> to vector<5x5xf32>
    %271 = arith.subf %267, %270 : vector<5x5xf32>
    %272 = math.exp %271 : vector<5x5xf32>
    %cst_211 = arith.constant dense<0.000000e+00> : vector<5xf32>
    %273 = vector.multi_reduction <add>, %272, %cst_211 [1] : vector<5x5xf32> to vector<5xf32>
    %274 = vector.shape_cast %273 : vector<5xf32> to vector<5x1xf32>
    %275 = tpu.reciprocal %274 {approx = true} : vector<5x1xf32> -> vector<5x1xf32>
    %276 = vector.broadcast %275 : vector<5x1xf32> to vector<5x5xf32>
    %277 = arith.mulf %272, %276 : vector<5x5xf32>
    %cst_212 = arith.constant dense<0.000000e+00> : vector<5x16xf32>
    %278 = tpu.matmul %277, %264, %cst_212 {dimension_numbers = #tpu.dot_dimension_numbers<[1], [0], [0], [1], [0, 0, 1, 1], [], []>} : vector<5x5xf32>, vector<5x16xf32>, vector<5x16xf32> -> vector<5x16xf32>
    %c1_213 = arith.constant 1 : index
    %c1_214 = arith.constant 1 : index
    %c0_215 = arith.constant 0 : index
    %c0_216 = arith.constant 0 : index
    %279 = vector.load %arg14[%c1_213, %c1_214, %c0_215, %c0_216] : memref<2x2x16x32xf32, #tpu.memory_space<vmem>>, vector<1x1x16x32xf32>
    %280 = vector.shape_cast %279 : vector<1x1x16x32xf32> to vector<16x32xf32>
    %cst_217 = arith.constant dense<0.000000e+00> : vector<5x32xf32>
    %281 = tpu.matmul %278, %280, %cst_217 {dimension_numbers = #tpu.dot_dimension_numbers<[1], [0], [0], [1], [0, 0, 1, 1], [], []>} : vector<5x16xf32>, vector<16x32xf32>, vector<5x32xf32> -> vector<5x32xf32>
    %282 = arith.addf %243, %281 : vector<5x32xf32>
    %c1_218 = arith.constant 1 : index
    %c0_219 = arith.constant 0 : index
    %c0_220 = arith.constant 0 : index
    %283 = vector.load %arg15[%c1_218, %c0_219, %c0_220] : memref<2x1x32xf32, #tpu.memory_space<vmem>>, vector<1x1x32xf32>
    %284 = vector.shape_cast %283 : vector<1x1x32xf32> to vector<1x32xf32>
    %285 = vector.broadcast %284 : vector<1x32xf32> to vector<5x32xf32>
    %286 = arith.addf %282, %285 : vector<5x32xf32>
    %c1_221 = arith.constant 1 : index
    %c0_222 = arith.constant 0 : index
    %c0_223 = arith.constant 0 : index
    %287 = vector.load %arg16[%c1_221, %c0_222, %c0_223] : memref<2x1x32xf32, #tpu.memory_space<vmem>>, vector<1x1x32xf32>
    %288 = vector.shape_cast %287 : vector<1x1x32xf32> to vector<1x32xf32>
    %289 = vector.broadcast %288 : vector<1x32xf32> to vector<5x32xf32>
    %290 = arith.mulf %289, %286 : vector<5x32xf32>
    %291 = arith.addf %177, %290 : vector<5x32xf32>
    %c1_224 = arith.constant 1 : index
    %c0_225 = arith.constant 0 : index
    %c0_226 = arith.constant 0 : index
    %292 = vector.load %arg17[%c1_224, %c0_225, %c0_226] : memref<2x1x32xf32, #tpu.memory_space<vmem>>, vector<1x1x32xf32>
    %293 = vector.shape_cast %292 : vector<1x1x32xf32> to vector<1x32xf32>
    %c1_227 = arith.constant 1 : index
    %c0_228 = arith.constant 0 : index
    %c0_229 = arith.constant 0 : index
    %294 = vector.load %arg18[%c1_227, %c0_228, %c0_229] : memref<2x1x32xf32, #tpu.memory_space<vmem>>, vector<1x1x32xf32>
    %295 = vector.shape_cast %294 : vector<1x1x32xf32> to vector<1x32xf32>
    %cst_230 = arith.constant dense<0.000000e+00> : vector<5xf32>
    %296 = vector.multi_reduction <add>, %291, %cst_230 [1] : vector<5x32xf32> to vector<5xf32>
    %297 = vector.shape_cast %296 : vector<5xf32> to vector<5x1xf32>
    %cst_231 = arith.constant 3.200000e+01 : f32
    %298 = vector.broadcast %cst_231 : f32 to vector<5x1xf32>
    %299 = arith.divf %297, %298 : vector<5x1xf32>
    %300 = vector.broadcast %299 : vector<5x1xf32> to vector<5x32xf32>
    %301 = arith.subf %291, %300 : vector<5x32xf32>
    %302 = arith.mulf %301, %301 : vector<5x32xf32>
    %cst_232 = arith.constant dense<0.000000e+00> : vector<5xf32>
    %303 = vector.multi_reduction <add>, %302, %cst_232 [1] : vector<5x32xf32> to vector<5xf32>
    %304 = vector.shape_cast %303 : vector<5xf32> to vector<5x1xf32>
    %cst_233 = arith.constant 3.200000e+01 : f32
    %305 = vector.broadcast %cst_233 : f32 to vector<5x1xf32>
    %306 = arith.divf %304, %305 : vector<5x1xf32>
    %307 = vector.broadcast %299 : vector<5x1xf32> to vector<5x32xf32>
    %308 = arith.subf %291, %307 : vector<5x32xf32>
    %cst_234 = arith.constant 9.99999997E-7 : f32
    %309 = vector.broadcast %cst_234 : f32 to vector<5x1xf32>
    %310 = arith.addf %306, %309 : vector<5x1xf32>
    %311 = math.rsqrt %310 : vector<5x1xf32>
    %312 = vector.broadcast %311 : vector<5x1xf32> to vector<5x32xf32>
    %313 = arith.mulf %308, %312 : vector<5x32xf32>
    %314 = vector.broadcast %293 : vector<1x32xf32> to vector<5x32xf32>
    %315 = arith.mulf %313, %314 : vector<5x32xf32>
    %316 = vector.broadcast %295 : vector<1x32xf32> to vector<5x32xf32>
    %317 = arith.addf %315, %316 : vector<5x32xf32>
    %c1_235 = arith.constant 1 : index
    %c0_236 = arith.constant 0 : index
    %c0_237 = arith.constant 0 : index
    %318 = vector.load %arg19[%c1_235, %c0_236, %c0_237] : memref<2x32x128xf32, #tpu.memory_space<vmem>>, vector<1x32x128xf32>
    %319 = vector.shape_cast %318 : vector<1x32x128xf32> to vector<32x128xf32>
    %cst_238 = arith.constant dense<0.000000e+00> : vector<5x128xf32>
    %320 = tpu.matmul %317, %319, %cst_238 {dimension_numbers = #tpu.dot_dimension_numbers<[1], [0], [0], [1], [0, 0, 1, 1], [], []>} : vector<5x32xf32>, vector<32x128xf32>, vector<5x128xf32> -> vector<5x128xf32>
    %c1_239 = arith.constant 1 : index
    %c0_240 = arith.constant 0 : index
    %c0_241 = arith.constant 0 : index
    %321 = vector.load %arg20[%c1_239, %c0_240, %c0_241] : memref<2x1x128xf32, #tpu.memory_space<vmem>>, vector<1x1x128xf32>
    %322 = vector.shape_cast %321 : vector<1x1x128xf32> to vector<1x128xf32>
    %323 = vector.broadcast %322 : vector<1x128xf32> to vector<5x128xf32>
    %324 = arith.addf %320, %323 : vector<5x128xf32>
    %cst_242 = arith.constant 5.000000e-01 : f32
    %325 = vector.broadcast %cst_242 : f32 to vector<5x128xf32>
    %326 = arith.mulf %325, %324 : vector<5x128xf32>
    %cst_243 = arith.constant 0.707106769 : f32
    %327 = vector.broadcast %cst_243 : f32 to vector<5x128xf32>
    %328 = arith.mulf %324, %327 : vector<5x128xf32>
    %329 = math.erf %328 : vector<5x128xf32>
    %cst_244 = arith.constant 1.000000e+00 : f32
    %330 = vector.broadcast %cst_244 : f32 to vector<5x128xf32>
    %331 = arith.addf %330, %329 : vector<5x128xf32>
    %332 = arith.mulf %326, %331 : vector<5x128xf32>
    %c1_245 = arith.constant 1 : index
    %c0_246 = arith.constant 0 : index
    %c0_247 = arith.constant 0 : index
    %333 = vector.load %arg21[%c1_245, %c0_246, %c0_247] : memref<2x128x32xf32, #tpu.memory_space<vmem>>, vector<1x128x32xf32>
    %334 = vector.shape_cast %333 : vector<1x128x32xf32> to vector<128x32xf32>
    %cst_248 = arith.constant dense<0.000000e+00> : vector<5x32xf32>
    %335 = tpu.matmul %332, %334, %cst_248 {dimension_numbers = #tpu.dot_dimension_numbers<[1], [0], [0], [1], [0, 0, 1, 1], [], []>} : vector<5x128xf32>, vector<128x32xf32>, vector<5x32xf32> -> vector<5x32xf32>
    %c1_249 = arith.constant 1 : index
    %c0_250 = arith.constant 0 : index
    %c0_251 = arith.constant 0 : index
    %336 = vector.load %arg22[%c1_249, %c0_250, %c0_251] : memref<2x1x32xf32, #tpu.memory_space<vmem>>, vector<1x1x32xf32>
    %337 = vector.shape_cast %336 : vector<1x1x32xf32> to vector<1x32xf32>
    %338 = vector.broadcast %337 : vector<1x32xf32> to vector<5x32xf32>
    %339 = arith.addf %335, %338 : vector<5x32xf32>
    %c1_252 = arith.constant 1 : index
    %c0_253 = arith.constant 0 : index
    %c0_254 = arith.constant 0 : index
    %340 = vector.load %arg23[%c1_252, %c0_253, %c0_254] : memref<2x1x32xf32, #tpu.memory_space<vmem>>, vector<1x1x32xf32>
    %341 = vector.shape_cast %340 : vector<1x1x32xf32> to vector<1x32xf32>
    %342 = vector.broadcast %341 : vector<1x32xf32> to vector<5x32xf32>
    %343 = arith.mulf %342, %339 : vector<5x32xf32>
    %344 = arith.addf %291, %343 : vector<5x32xf32>
    %345 = vector.extract_strided_slice %344 {offsets = [0, 0], sizes = [1, 32], strides = [1, 1]} : vector<5x32xf32> to vector<1x32xf32>
    %c0_255 = arith.constant 0 : index
    %c0_256 = arith.constant 0 : index
    %346 = vector.load %arg24[%c0_255, %c0_256] : memref<1x32xf32, #tpu.memory_space<vmem>>, vector<1x32xf32>
    %c0_257 = arith.constant 0 : index
    %c0_258 = arith.constant 0 : index
    %347 = vector.load %arg25[%c0_257, %c0_258] : memref<1x32xf32, #tpu.memory_space<vmem>>, vector<1x32xf32>
    %cst_259 = arith.constant dense<0.000000e+00> : vector<1xf32>
    %348 = vector.multi_reduction <add>, %345, %cst_259 [1] : vector<1x32xf32> to vector<1xf32>
    %349 = vector.shape_cast %348 : vector<1xf32> to vector<1x1xf32>
    %cst_260 = arith.constant 3.200000e+01 : f32
    %350 = vector.broadcast %cst_260 : f32 to vector<1x1xf32>
    %351 = arith.divf %349, %350 : vector<1x1xf32>
    %352 = vector.broadcast %351 : vector<1x1xf32> to vector<1x32xf32>
    %353 = arith.subf %345, %352 : vector<1x32xf32>
    %354 = arith.mulf %353, %353 : vector<1x32xf32>
    %cst_261 = arith.constant dense<0.000000e+00> : vector<1xf32>
    %355 = vector.multi_reduction <add>, %354, %cst_261 [1] : vector<1x32xf32> to vector<1xf32>
    %356 = vector.shape_cast %355 : vector<1xf32> to vector<1x1xf32>
    %cst_262 = arith.constant 3.200000e+01 : f32
    %357 = vector.broadcast %cst_262 : f32 to vector<1x1xf32>
    %358 = arith.divf %356, %357 : vector<1x1xf32>
    %359 = vector.broadcast %351 : vector<1x1xf32> to vector<1x32xf32>
    %360 = arith.subf %345, %359 : vector<1x32xf32>
    %cst_263 = arith.constant 9.99999997E-7 : f32
    %361 = vector.broadcast %cst_263 : f32 to vector<1x1xf32>
    %362 = arith.addf %358, %361 : vector<1x1xf32>
    %363 = math.rsqrt %362 : vector<1x1xf32>
    %364 = vector.broadcast %363 : vector<1x1xf32> to vector<1x32xf32>
    %365 = arith.mulf %360, %364 : vector<1x32xf32>
    %366 = arith.mulf %365, %346 : vector<1x32xf32>
    %367 = arith.addf %366, %347 : vector<1x32xf32>
    %c0_264 = arith.constant 0 : index
    %c0_265 = arith.constant 0 : index
    %c0_266 = arith.constant 0 : index
    %368 = vector.load %arg26[%c0_264, %c0_265, %c0_266] : memref<1x1x32xf32, #tpu.memory_space<vmem>>, vector<1x1x32xf32>
    %369 = vector.shape_cast %368 : vector<1x1x32xf32> to vector<1x32xf32>
    %370 = vector.shape_cast %367 : vector<1x32xf32> to vector<1x1x32xf32>
    tpu.vector_store %arg26[%c0_264, %c0_265, %c0_266], %370 {strides = array<i32>} : memref<1x1x32xf32, #tpu.memory_space<vmem>>, vector<1x1x32xf32>,
    return
  }
  func.func @transform_0(%arg0: i32) -> (i32, i32, i32) {
    %c0_i32 = arith.constant 0 : i32
    %c0_i32_0 = arith.constant 0 : i32
    %c0_i32_1 = arith.constant 0 : i32
    return %arg0, %c0_i32, %c0_i32_0 : i32, i32, i32
  }
  func.func @transform_1(%arg0: i32) -> (i32, i32) {
    %c0_i32 = arith.constant 0 : i32
    %c0_i32_0 = arith.constant 0 : i32
    %c0_i32_1 = arith.constant 0 : i32
    return %c0_i32, %c0_i32_0 : i32, i32
  }
  func.func @transform_2(%arg0: i32) -> (i32, i32) {
    %c0_i32 = arith.constant 0 : i32
    %c0_i32_0 = arith.constant 0 : i32
    %c0_i32_1 = arith.constant 0 : i32
    return %c0_i32, %c0_i32_0 : i32, i32
  }
  func.func @transform_3(%arg0: i32) -> (i32, i32) {
    %c0_i32 = arith.constant 0 : i32
    %c0_i32_0 = arith.constant 0 : i32
    %c0_i32_1 = arith.constant 0 : i32
    return %c0_i32, %c0_i32_0 : i32, i32
  }
  func.func @transform_4(%arg0: i32) -> (i32, i32) {
    %c0_i32 = arith.constant 0 : i32
    %c0_i32_0 = arith.constant 0 : i32
    %c0_i32_1 = arith.constant 0 : i32
    return %c0_i32, %c0_i32_0 : i32, i32
  }
  func.func @transform_5(%arg0: i32) -> (i32, i32, i32) {
    %c0_i32 = arith.constant 0 : i32
    %c0_i32_0 = arith.constant 0 : i32
    %c0_i32_1 = arith.constant 0 : i32
    %c0_i32_2 = arith.constant 0 : i32
    return %c0_i32, %c0_i32_0, %c0_i32_1 : i32, i32, i32
  }
  func.func @transform_6(%arg0: i32) -> (i32, i32, i32) {
    %c0_i32 = arith.constant 0 : i32
    %c0_i32_0 = arith.constant 0 : i32
    %c0_i32_1 = arith.constant 0 : i32
    %c0_i32_2 = arith.constant 0 : i32
    return %c0_i32, %c0_i32_0, %c0_i32_1 : i32, i32, i32
  }
  func.func @transform_7(%arg0: i32) -> (i32, i32, i32, i32) {
    %c0_i32 = arith.constant 0 : i32
    %c0_i32_0 = arith.constant 0 : i32
    %c0_i32_1 = arith.constant 0 : i32
    %c0_i32_2 = arith.constant 0 : i32
    %c0_i32_3 = arith.constant 0 : i32
    return %c0_i32, %c0_i32_0, %c0_i32_1, %c0_i32_2 : i32, i32, i32, i32
  }
  func.func @transform_8(%arg0: i32) -> (i32, i32, i32, i32) {
    %c0_i32 = arith.constant 0 : i32
    %c0_i32_0 = arith.constant 0 : i32
    %c0_i32_1 = arith.constant 0 : i32
    %c0_i32_2 = arith.constant 0 : i32
    %c0_i32_3 = arith.constant 0 : i32
    return %c0_i32, %c0_i32_0, %c0_i32_1, %c0_i32_2 : i32, i32, i32, i32
  }
  func.func @transform_9(%arg0: i32) -> (i32, i32, i32, i32) {
    %c0_i32 = arith.constant 0 : i32
    %c0_i32_0 = arith.constant 0 : i32
    %c0_i32_1 = arith.constant 0 : i32
    %c0_i32_2 = arith.constant 0 : i32
    %c0_i32_3 = arith.constant 0 : i32
    return %c0_i32, %c0_i32_0, %c0_i32_1, %c0_i32_2 : i32, i32, i32, i32
  }
  func.func @transform_10(%arg0: i32) -> (i32, i32, i32, i32) {
    %c0_i32 = arith.constant 0 : i32
    %c0_i32_0 = arith.constant 0 : i32
    %c0_i32_1 = arith.constant 0 : i32
    %c0_i32_2 = arith.constant 0 : i32
    %c0_i32_3 = arith.constant 0 : i32
    return %c0_i32, %c0_i32_0, %c0_i32_1, %c0_i32_2 : i32, i32, i32, i32
  }
  func.func @transform_11(%arg0: i32) -> (i32, i32, i32, i32) {
    %c0_i32 = arith.constant 0 : i32
    %c0_i32_0 = arith.constant 0 : i32
    %c0_i32_1 = arith.constant 0 : i32
    %c0_i32_2 = arith.constant 0 : i32
    %c0_i32_3 = arith.constant 0 : i32
    return %c0_i32, %c0_i32_0, %c0_i32_1, %c0_i32_2 : i32, i32, i32, i32
  }
  func.func @transform_12(%arg0: i32) -> (i32, i32, i32, i32) {
    %c0_i32 = arith.constant 0 : i32
    %c0_i32_0 = arith.constant 0 : i32
    %c0_i32_1 = arith.constant 0 : i32
    %c0_i32_2 = arith.constant 0 : i32
    %c0_i32_3 = arith.constant 0 : i32
    return %c0_i32, %c0_i32_0, %c0_i32_1, %c0_i32_2 : i32, i32, i32, i32
  }
  func.func @transform_13(%arg0: i32) -> (i32, i32, i32, i32) {
    %c0_i32 = arith.constant 0 : i32
    %c0_i32_0 = arith.constant 0 : i32
    %c0_i32_1 = arith.constant 0 : i32
    %c0_i32_2 = arith.constant 0 : i32
    %c0_i32_3 = arith.constant 0 : i32
    return %c0_i32, %c0_i32_0, %c0_i32_1, %c0_i32_2 : i32, i32, i32, i32
  }
  func.func @transform_14(%arg0: i32) -> (i32, i32, i32) {
    %c0_i32 = arith.constant 0 : i32
    %c0_i32_0 = arith.constant 0 : i32
    %c0_i32_1 = arith.constant 0 : i32
    %c0_i32_2 = arith.constant 0 : i32
    return %c0_i32, %c0_i32_0, %c0_i32_1 : i32, i32, i32
  }
  func.func @transform_15(%arg0: i32) -> (i32, i32, i32) {
    %c0_i32 = arith.constant 0 : i32
    %c0_i32_0 = arith.constant 0 : i32
    %c0_i32_1 = arith.constant 0 : i32
    %c0_i32_2 = arith.constant 0 : i32
    return %c0_i32, %c0_i32_0, %c0_i32_1 : i32, i32, i32
  }
  func.func @transform_16(%arg0: i32) -> (i32, i32, i32) {
    %c0_i32 = arith.constant 0 : i32
    %c0_i32_0 = arith.constant 0 : i32
    %c0_i32_1 = arith.constant 0 : i32
    %c0_i32_2 = arith.constant 0 : i32
    return %c0_i32, %c0_i32_0, %c0_i32_1 : i32, i32, i32
  }
  func.func @transform_17(%arg0: i32) -> (i32, i32, i32) {
    %c0_i32 = arith.constant 0 : i32
    %c0_i32_0 = arith.constant 0 : i32
    %c0_i32_1 = arith.constant 0 : i32
    %c0_i32_2 = arith.constant 0 : i32
    return %c0_i32, %c0_i32_0, %c0_i32_1 : i32, i32, i32
  }
  func.func @transform_18(%arg0: i32) -> (i32, i32, i32) {
    %c0_i32 = arith.constant 0 : i32
    %c0_i32_0 = arith.constant 0 : i32
    %c0_i32_1 = arith.constant 0 : i32
    %c0_i32_2 = arith.constant 0 : i32
    return %c0_i32, %c0_i32_0, %c0_i32_1 : i32, i32, i32
  }
  func.func @transform_19(%arg0: i32) -> (i32, i32, i32) {
    %c0_i32 = arith.constant 0 : i32
    %c0_i32_0 = arith.constant 0 : i32
    %c0_i32_1 = arith.constant 0 : i32
    %c0_i32_2 = arith.constant 0 : i32
    return %c0_i32, %c0_i32_0, %c0_i32_1 : i32, i32, i32
  }
  func.func @transform_20(%arg0: i32) -> (i32, i32, i32) {
    %c0_i32 = arith.constant 0 : i32
    %c0_i32_0 = arith.constant 0 : i32
    %c0_i32_1 = arith.constant 0 : i32
    %c0_i32_2 = arith.constant 0 : i32
    return %c0_i32, %c0_i32_0, %c0_i32_1 : i32, i32, i32
  }
  func.func @transform_21(%arg0: i32) -> (i32, i32, i32) {
    %c0_i32 = arith.constant 0 : i32
    %c0_i32_0 = arith.constant 0 : i32
    %c0_i32_1 = arith.constant 0 : i32
    %c0_i32_2 = arith.constant 0 : i32
    return %c0_i32, %c0_i32_0, %c0_i32_1 : i32, i32, i32
  }
  func.func @transform_22(%arg0: i32) -> (i32, i32, i32) {
    %c0_i32 = arith.constant 0 : i32
    %c0_i32_0 = arith.constant 0 : i32
    %c0_i32_1 = arith.constant 0 : i32
    %c0_i32_2 = arith.constant 0 : i32
    return %c0_i32, %c0_i32_0, %c0_i32_1 : i32, i32, i32
  }
  func.func @transform_23(%arg0: i32) -> (i32, i32) {
    %c0_i32 = arith.constant 0 : i32
    %c0_i32_0 = arith.constant 0 : i32
    %c0_i32_1 = arith.constant 0 : i32
    return %c0_i32, %c0_i32_0 : i32, i32
  }
  func.func @transform_24(%arg0: i32) -> (i32, i32) {
    %c0_i32 = arith.constant 0 : i32
    %c0_i32_0 = arith.constant 0 : i32
    %c0_i32_1 = arith.constant 0 : i32
    return %c0_i32, %c0_i32_0 : i32, i32
  }
  func.func @transform_25(%arg0: i32) -> (i32, i32, i32) {
    %c0_i32 = arith.constant 0 : i32
    %c0_i32_0 = arith.constant 0 : i32
    %c0_i32_1 = arith.constant 0 : i32
    return %arg0, %c0_i32, %c0_i32_0 : i32, i32, i32
  }
}

</mosaic_0001>

<bundles_post_ra>
// kernel: _lambda_.1
= control target key start
LH: loop header
LB: loop body
LE: loop exit
PB: predicated region body
PF: predicated region fallthrough
CT: control target
= control target key end

     0   :  { %s5360_s0 = inlined_call_operand.vmem [shape: f32[2,4,192], index: 0, kind: input, shape index: {}]   ;;  %s5361_s1 = inlined_call_operand.vmem [shape: f32[192,32], index: 1, kind: input, shape index: {}]   ;;  %s5362_s2 = inlined_call_operand.vmem [shape: f32[1,32], index: 2, kind: input, shape index: {}, may-alias: {2,24}]   ;;  %s5363_s3 = inlined_call_operand.vmem [shape: f32[1,32], index: 3, kind: input, shape index: {}]   ;;  %s5364_s4 = inlined_call_operand.vmem [shape: f32[5,32], index: 4, kind: input, shape index: {}]   ;;  %s5365_s5 = inlined_call_operand.vmem [shape: f32[2,1,32], index: 5, kind: input, shape index: {}, may-alias: {5,16}]   ;;  %s5366_s6 = inlined_call_operand.vmem [shape: f32[2,1,32], index: 6, kind: input, shape index: {}, may-alias: {6,14,17,21}]   ;;  %s5367_s7 = inlined_call_operand.vmem [shape: f32[2,2,32,16], index: 7, kind: input, shape index: {}]   ;;  %s5368_s8 = inlined_call_operand.vmem [shape: f32[2,2,1,16], index: 8, kind: input, shape index: {}, may-alias: {8,10,12}]   ;;  %s5369_s9 = inlined_call_operand.vmem [shape: f32[2,2,32,16], index: 9, kind: input, shape index: {}]   ;;  %s5370_s10 = inlined_call_operand.vmem [shape: f32[2,2,1,16], index: 10, kind: input, shape index: {}, may-alias: {8,10,12}]   ;;  %s5371_s11 = inlined_call_operand.vmem [shape: f32[2,2,32,16], index: 11, kind: input, shape index: {}]   ;;  %s5372_s12 = inlined_call_operand.vmem [shape: f32[2,2,1,16], index: 12, kind: input, shape index: {}, may-alias: {8,10,12}]   ;;  %s5373_s13 = inlined_call_operand.hbm [shape: f32[2,2,16,32], index: 13, kind: input, shape index: {}]   ;;  %s5374_s14 = inlined_call_operand.vmem [shape: f32[2,1,32], index: 14, kind: input, shape index: {}, may-alias: {6,14,17,21}]   ;;  %s5375_s15 = inlined_call_operand.vmem [shape: f32[2,1,32], index: 15, kind: input, shape index: {}, may-alias: {15,22}]   ;;  %s5376_s16 = inlined_call_operand.vmem [shape: f32[2,1,32], index: 16, kind: input, shape index: {}, may-alias: {5,16}]   ;;  %s5377_s17 = inlined_call_operand.vmem [shape: f32[2,1,32], index: 17, kind: input, shape index: {}, may-alias: {6,14,17,21}]   ;;  %s5378_s18 = inlined_call_operand.vmem [shape: f32[2,32,128], index: 18, kind: input, shape index: {}]   ;;  %s5379_s19 = inlined_call_operand.vmem [shape: f32[2,1,128], index: 19, kind: input, shape index: {}]   ;;  %s5380_s20 = inlined_call_operand.vmem [shape: f32[2,128,32], index: 20, kind: input, shape index: {}]   ;;  %s5381_s21 = inlined_call_operand.vmem [shape: f32[2,1,32], index: 21, kind: input, shape index: {}, may-alias: {6,14,17,21}]   ;;  %s5382_s22 = inlined_call_operand.vmem [shape: f32[2,1,32], index: 22, kind: input, shape index: {}, may-alias: {15,22}]   ;;  %s5383_s23 = inlined_call_operand.vmem [shape: f32[1,32], index: 23, kind: input, shape index: {}]   ;;  %s5384_s24 = inlined_call_operand.vmem [shape: f32[1,32], index: 24, kind: input, shape index: {}, may-alias: {2,24}]   ;;  %s5385_s25 = inlined_call_operand.hbm [shape: f32[2,1,32], index: 25, kind: output, shape index: {}]  }
   0x1   :  { %5405 = sst [smem:[#allocation14_spill]] %s5360_s0 }
   0x2   :  { %5406 = sst [smem:[#allocation15_spill]] %s5361_s1 }
   0x3   :  { %5407 = sst [smem:[#allocation16_spill]] %s5362_s2 }
   0x4   :  { %5408 = sst [smem:[#allocation17_spill]] %s5363_s3 }
   0x5   :  { %5409 = sst [smem:[#allocation18_spill]] %s5364_s4 }
   0x6   :  { %5410 = sst [smem:[#allocation19_spill]] %s5365_s5 }
   0x7   :  { %5411 = sst [smem:[#allocation20_spill]] %s5366_s6 }
   0x8   :  { %5412 = sst [smem:[#allocation21_spill]] %s5367_s7 }
   0x9   :  { %5413 = sst [smem:[#allocation22_spill]] %s5368_s8 }
   0xa   :  { %5414 = sst [smem:[#allocation23_spill]] %s5369_s9 }
   0xb   :  { %5415 = sst [smem:[#allocation24_spill]] %s5370_s10 }
   0xc   :  { %5416 = sst [smem:[#allocation25_spill]] %s5373_s13 }
   0xd   :  { %5417 = sst [smem:[#allocation26_spill]] %s5384_s24 }
   0xe   :  { %5418 = sst [smem:[#allocation27_spill]] %s5385_s25 }
   0xf   :  { %30 = vsyncpa [#allocation3], 0 }
  0x10   :  { %31 = vsyncpa [#allocation4], 0 }
  0x11   :  { %33 = vsyncpa [#allocation4 + $0x1], 0  ;;  %s4571_s29 = smov 0   ;;  %s4573_s2 = smov 0  }
  0x12   :  { %s4575_s6 = smov 0   ;;  %s4577_s30 = smov 0  }
  0x13 LB: > { %5419 = sst [smem:[#allocation8_spill]] %s4420_s29  ;;  %s4592_s7 = sadd.s32 4294967295, %s4432_s30   ;;  %s4432_s30 = sphi %s4577_s30, %s5452_s30   ;;  %s4428_s6 = sphi %s4575_s6, %s5454_s6   ;;  %s4424_s2 = sphi %s4573_s2, %s5456_s2   ;;  %s4420_s29 = sphi %s4571_s29, %s5455_s29  }
  0x14   : > { %5420 = sst [smem:[#allocation9_spill]] %s4428_s6  ;;  %s3496_s3 = sadd.s32 4294967294, %s4432_s30  }
  0x15   : > { %5421 = sst [smem:[#allocation10_spill]] %s4432_s30  ;;  %s4596_s26 = sadd.s32 1, %s4432_s30  }
  0x16   : > { %5422 = sst [smem:[#allocation11_spill]] %s4596_s26  ;;  %s576_s1 = sadd.s32 1, %s4428_s6 }
  0x17   : > { %s573_s8 = ssub.s32 %s4432_s30, %s4596_s26  ;;  %p586_p0 = scmp.ne.s32.totalorder %s4428_s6, %s4424_s2 }
  0x18   : > { %p574_p1 = scmp.eq.s32.totalorder %s573_s8, 0  ;;  %p587_p2 = scmp.eq.s32.totalorder %s4592_s7, 1 }
  0x19   : > { %p592_p3 = scmp.ne.s32.totalorder %s4424_s2, %s4420_s29  ;;  %p593_p4 = scmp.eq.s32.totalorder %s3496_s3, 1 }
  0x1a   : > { %s4607_s27 = scalar_select %p574_p1, %s4428_s6, %s576_s1  }
  0x1b   : > { %p4609_p5 = por %p587_p2, %p586_p0  ;;  %p4613_p6 = por %p593_p4, %p592_p3 }
  0x1c   : > { %5423 = sst [smem:[#allocation12_spill]] %s4607_s27  ;;  %p3497_p7 = scmp.ge.s32.totalorder %s4432_s30, 1 }
  0x1d   : > { %s5424_s4 = scalar_select %p4609_p5, 1, 0 }
  0x1e   : > { %s5425_s28 = scalar_select %p4613_p6, 1, 0 }
  0x1f   : > { %p600_p8 = scmp.lt.s32.totalorder %s4432_s30, 3  ;;  %p5397_p9 = scmp.eq.s32.totalorder %s4592_s7, 0 }
  0x20   : > { %5426 = sst [smem:[#allocation13_spill]] %s5425_s28  ;;  %s4434_s5 = smov [#allocation2]  }
  0x21   : > { %p4620_p10 = pnand %p3497_p7, %p600_p8  ;;  %s648_s0 = sshll.u32 %s4434_s5, 4  ;;  %s649_s0 = int_to_ptr.vmem [resolvable:$true] %s648_s0 }
  0x22   : > { %s5429_s13 = sld [smem:[#allocation25_spill]] }
  0x23   : > { %s5427_s9 = scalar_select %p4620_p10, 1, 0 }
  0x24   : > { %p4258_p11 = pneg %p4620_p10 }
  0x26   : > { %p4628_p12 = pnand %p5397_p9, %p4258_p11 }
  0x28   : > { %s4338_s27 = scalar_lea.hbm %s5429_s13, 1024  ;;  %p4340_p0 = pneg %p4628_p12 }
  0x29   : > { %p4339_p13 = scmp.ne.s32.totalorder %s5429_s13, %s4338_s27  ;;  %p4345_p3 = scmp.lt.u32.totalorder %s4338_s27, %s5429_s13 }
  0x2b   : > { %p4341_p1 = pnand %p4340_p0, %p4339_p13 }
  0x2d   : > { %p4342_p2 = pneg %p4341_p1 }
  0x2f   : > { %p4347_p4 = pnand %p4345_p3, %p4342_p2 }
  0x31   : > { %4350 = shalt.err (!%p4347_p4)
}
  0x32   : > { %s4351_s29 = scalar_lea.vmem %s649_s0, 1024  ;;  %p4359_p9 = scmp.lt.s32.totalorder %s649_s0, %s649_s0 }
  0x33   : > { %p4352_p7 = scmp.ne.s32.totalorder %s649_s0, %s4351_s29  ;;  %p4360_p6 = scmp.lt.s32.totalorder %s4351_s29, %s4351_s29 }
  0x35   : > { %p4354_p8 = pnand %p4352_p7, %p4340_p0  ;;  %p4361_p5 = por %p4360_p6, %p4359_p9 }
  0x37   : > { %p4355_p11 = pneg %p4354_p8 }
  0x39   : > { %p4362_p10 = pnand %p4361_p5, %p4355_p11 }
  0x3b   : > { %4365 = shalt.err (!%p4362_p10)
}
  0x3c   : > { %s4435_s6 = smov 128   ;;  %s4436_s26 = smov 8  }
  0x3d   : > { %4261 = dma.hbm_to_vmem [thread:$0]  (!%p4628_p12), %s5429_s13, 1024, %s649_s0, [#allocation3], %s4435_s6, %s4435_s6, %s4436_s26  }
  0x3e   : > { %p5430_p13 = scmp.ne.s32.totalorder %s5427_s9, 0 }
  0x3f   : > { %p5431_p1 = scmp.eq.s32.totalorder (!%p5430_p13), %s4592_s7, 0 }
  0x40   : > { %705 = sbr.rel (%p5430_p13) target bundleno = 6692 (0x1a24), region = 120 }
  0x47   : > { %4411 = dma.done.wait (%p5431_p1), [#allocation3], 1024   ;;  %p5432_p0 = pmov %p5431_p1 }
  0x48   : > { %v4437_v0 = vmov 0.0|0.0   ;;  %p772_p5 = scmp.lt.s32.totalorder %s4592_s7, 1  ;;  %s5433_s0 = sld [smem:[#allocation15_spill]]  ;;  %vm811_vm0 = vcmask 523264   ;;  %vm888_vm1 = vcmask 1040384   ;;  %vm894_vm2 = vcmask 258048  }
  0x49   : > { %4413 = vsyncadd (%p5432_p0), [#allocation3], 4294966272  ;;  %4072 = vmatprep.subr.bf16.mxu0 %v4437_v0  ;;  %4114 = vmatprep.subr.bf16.mxu1 %v4437_v0  ;;  %s5434_s13 = sld [smem:[#allocation14_spill]]  ;;  %s5435_s5 = sld [smem:[#allocation16_spill]]  ;;  %vm4438_vm3 = vmmov 0   ;;  %vm934_vm4 = vcmask 261120  }
  0x4a   : > { %s773_s29 = scalar_select %p772_p5, %s4592_s7, 1  ;;  %vm1171_vm5 = vcmask 130048   ;;  %vm1264_vm6 = vcmask 1044480   ;;  %vm1248_vm7 = vcmask 36864   ;;  %vm1260_vm8 = vcmask 39936  }
  0x4b   : > { %s5436_s26 = sld [smem:[#allocation17_spill]]  ;;  %s5438_s25 = sld [smem:[#allocation23_spill]]  ;;  %vm3399_vm9 = vcmask 253952  }
  0x4c   : > { %s3647_s8 = sshll.u32 %s773_s29, 3  ;;  %s5439_s6 = sld [smem:[#allocation21_spill]] }
  0x4d   : > { %s5441_s1 = sld [smem:[#allocation19_spill]]  ;;  %s5442_s3 = sld [smem:[#allocation20_spill]] }
  0x4e   : > { %v778_v1 = vld [vmem:[%s5433_s0] sm:$0xff]  ;;  %v779_v2 = vld [vmem:[%s5433_s0 + $0x8] sm:$0xff]  ;;  %v780_v3 = vld [vmem:[%s5433_s0 + $0x10] sm:$0xff]  ;;  %s5443_s28 = sld [smem:[#allocation22_spill]]  ;;  %s5444_s10 = sld [smem:[#allocation24_spill]] }
  0x4f   : > { %v4073_v4 = vpack.c.bf16 %v779_v2, %v778_v1  ;;  %v781_v5 = vld [vmem:[%s5433_s0 + $0x18] sm:$0xff]  ;;  %v782_v7 = vld [vmem:[%s5433_s0 + $0x20] sm:$0xff]  ;;  %v783_v8 = vld [vmem:[%s5433_s0 + $0x28] sm:$0xff]  ;;  %s776_s30 = scalar_lea.vmem %s5434_s13, %s3647_s8  ;;  %s5437_s8 = sld [smem:[#allocation18_spill]] }
  0x50   : > { %v4076_v6 = vpack.c.bf16 %v781_v5, %v780_v3  ;;  %v4079_v9 = vpack.c.bf16 %v783_v8, %v782_v7  ;;  %v784_v10 = vld [vmem:[%s5433_s0 + $0x30] sm:$0xff]  ;;  %v785_v11 = vld [vmem:[%s5433_s0 + $0x38] sm:$0xff]  ;;  %v777_v12 = vld [vmem:[%s776_s30] sm:$0xff]  ;;  %v4439_v3 = vmov 0.0   ;;  %s5445_s9 = sld [smem:[#allocation26_spill]]  ;;  %p5447_p9 = scmp.ne.s32.totalorder %s5424_s4, 0 }
  0x51   : > { %4074 = vmatpush1.bf16.msra.mxu0 %v4073_v4  ;;  %v810_v13 = vcombine.high %v777_v12, %v777_v12  ;;  %v4082_v14 = vpack.c.bf16 %v785_v11, %v784_v10  ;;  %v786_v15 = vld [vmem:[%s5433_s0 + $0x40] sm:$0xff]  ;;  %v787_v16 = vld [vmem:[%s5433_s0 + $0x48] sm:$0xff]  ;;  %v788_v18 = vld [vmem:[%s5433_s0 + $0x50] sm:$0xff]  ;;  %3799 = vmatprep.mubr.msk.f32.mxu1 %vm4438_vm3, %v4439_v3 }
  0x52   : > { %4075 = vmatprep.subr.bf16.mxu0 %v4437_v0  ;;  %v4085_v17 = vpack.c.bf16 %v787_v16, %v786_v15  ;;  %v789_v19 = vld [vmem:[%s5433_s0 + $0x58] sm:$0xff]  ;;  %v790_v21 = vld [vmem:[%s5433_s0 + $0x60] sm:$0xff]  ;;  %v791_v22 = vld [vmem:[%s5433_s0 + $0x68] sm:$0xff] }
  0x53   : > { %3505 = vmatprep.mubr.msk.f32.mxu0 %vm811_vm0, %v810_v13  ;;  %v4088_v20 = vpack.c.bf16 %v789_v19, %v788_v18  ;;  %v4091_v23 = vpack.c.bf16 %v791_v22, %v790_v21  ;;  %v792_v24 = vld [vmem:[%s5433_s0 + $0x70] sm:$0xff]  ;;  %v793_v25 = vld [vmem:[%s5433_s0 + $0x78] sm:$0xff]  ;;  %v794_v27 = vld [vmem:[%s5433_s0 + $0x80] sm:$0xff] }
  0x54   : > { %v4094_v26 = vpack.c.bf16 %v793_v25, %v792_v24  ;;  %v795_v28 = vld [vmem:[%s5433_s0 + $0x88] sm:$0xff]  ;;  %v796_v30 = vld [vmem:[%s5433_s0 + $0x90] sm:$0xff]  ;;  %v797_v31 = vld [vmem:[%s5433_s0 + $0x98] sm:$0xff] }
  0x55   : > { %4077 = vmatpush1.bf16.msra.mxu0 %v4076_v6  ;;  %v4097_v29 = vpack.c.bf16 %v795_v28, %v794_v27  ;;  %v4100_v32 = vpack.c.bf16 %v797_v31, %v796_v30  ;;  %v798_v33 = vld [vmem:[%s5433_s0 + $0xa0] sm:$0xff]  ;;  %v799_v34 = vld [vmem:[%s5433_s0 + $0xa8] sm:$0xff]  ;;  %v800_v36 = vld [vmem:[%s5433_s0 + $0xb0] sm:$0xff] }
  0x56   : > { %4078 = vmatprep.subr.bf16.mxu0 %v4437_v0  ;;  %v4103_v35 = vpack.c.bf16 %v799_v34, %v798_v33  ;;  %v801_v37 = vld [vmem:[%s5433_s0 + $0xb8] sm:$0xff]  ;;  %v3504_v39 = vld [vmem:[%s5435_s5] ss:$0 sm:$0xff]  ;;  %v1009_v55 = vld [vmem:[%s5438_s25 + $0x8] sm:$0xff]  ;;  %s3644_s5 = sshll.u32 %s4592_s7, 4  ;;  %s4440_s7 = smov [#allocation5]  }
  0x57   : > { %v4106_v38 = vpack.c.bf16 %v801_v37, %v800_v36  ;;  %v884_v43 = vld [vmem:[%s5436_s26] sm:$0x1]  ;;  %s5440_s26 = smov %s5439_s6  ;;  %v1010_v60 = vld [vmem:[%s5438_s25 + $0x10] sm:$0xff]  ;;  %v1011_v61 = vld [vmem:[%s5438_s25 + $0x18] sm:$0xff]  ;;  %s4370_s0 = sshll.u32 %s4440_s7, 4  ;;  %s4371_s0 = int_to_ptr.vmem [resolvable:$false] %s4370_s0 }
  0x58   : > { %v890_v45 = vld [vmem:[%s5437_s8] sm:$0x1f]  ;;  %v924_v58 = vld [vmem:[%s5440_s26 + $0x8] sm:$0xff]  ;;  %v4118_v62 = vpack.c.bf16 %v1011_v61, %v1010_v60  ;;  %v925_v63 = vld [vmem:[%s5440_s26 + $0x10] sm:$0xff]  ;;  %s770_s8 = sand.u32 1, %s4424_s2   ;;  %s4372_s30 = scalar_lea.vmem %s4371_s0, 32 }
  0x59   : > { %4080 = vmatpush1.bf16.msra.mxu0 %v4079_v9  ;;  %v1008_v54 = vld [vmem:[%s5438_s25] sm:$0xff]  ;;  %v926_v1 = vld [vmem:[%s5440_s26 + $0x18] sm:$0xff]  ;;  %v1090_v11 = vld [vmem:[%s5371_s11 + $0x8] sm:$0xff]  ;;  %s3417_s27 = scalar_lea.sflag [#allocation4], %s770_s8 }
  0x5a   : > { %4081 = vmatprep.subr.bf16.mxu0 %v4437_v0  ;;  %v4115_v56 = vpack.c.bf16 %v1009_v55, %v1008_v54  ;;  %v923_v57 = vld [vmem:[%s5439_s6] sm:$0xff]  ;;  %v4112_v2 = vpack.c.bf16 %v926_v1, %v925_v63  ;;  %v1091_v16 = vld [vmem:[%s5371_s11 + $0x10] sm:$0xff]  ;;  %v3533_v24 = vld [vmem:[%s5371_s11 + $0x28] sm:$0xff]  ;;  %s771_s6 = scalar_lea.vmem [#allocation5], %s770_s8 }
  0x5b   : > { %v4109_v59 = vpack.c.bf16 %v924_v58, %v923_v57  ;;  %v3506_v8 = vld [vmem:[%s5441_s1] ss:$0 sm:$0xff]  ;;  %v3534_v31 = vld [vmem:[%s5371_s11 + $0x30] sm:$0xff]  ;;  %s3429_s29 = sshll.u32 %s771_s6, 4  ;;  %s5319_s29 = int_to_ptr.vmem [resolvable:$true] %s3429_s29 }
  0x5c   : > { %4116 = vmatpush3.bf16.msra.mxu1 %v4115_v56  ;;  %v1089_v10 = vld [vmem:[%s5371_s11] sm:$0xff]  ;;  %v3520_v55 = vld [vmem:[%s5440_s26 + $0x30] sm:$0xff]  ;;  %v3521_v56 = vld [vmem:[%s5440_s26 + $0x38] sm:$0xff]  ;;  %s4366_s24 = scalar_lea.vmem %s5319_s29, 16  ;;  %p4373_p2 = scmp.lt.s32.totalorder %s5319_s29, %s4371_s0 }
  0x5d   : > { %4083 = vmatpush1.bf16.msra.mxu0 %v4082_v14  ;;  %4117 = vmatprep.subr.bf16.mxu1 %v4437_v0  ;;  %v4121_v14 = vpack.c.bf16 %v1090_v11, %v1089_v10  ;;  %v3508_v19 = vld [vmem:[%s5443_s28] ss:$0 sm:$0xff]  ;;  %v4130_v57 = vpack.c.bf16 %v3521_v56, %v3520_v55  ;;  %v3527_v61 = vld [vmem:[%s5438_s25 + $0x30] sm:$0xff]  ;;  %p4367_p6 = scmp.ne.s32.totalorder %s5319_s29, %s4366_s24  ;;  %p4374_p3 = scmp.lt.s32.totalorder %s4372_s30, %s4366_s24 }
  0x5e   : > { %4084 = vmatprep.subr.bf16.mxu0 %v4437_v0  ;;  %v3512_v33 = vld [vmem:[%s5372_s12] ss:$0 sm:$0xff] }
  0x5f   : > { %v3525_v58 = vld [vmem:[%s5438_s25 + $0x20] sm:$0xff]  ;;  %p4368_p10 = pnand %p4367_p6, %p5447_p9  ;;  %p4375_p4 = por %p4374_p3, %p4373_p2 }
  0x60   : > { %4119 = vmatpush3.bf16.msra.mxu1 %v4118_v62  ;;  %v3528_v62 = vld [vmem:[%s5438_s25 + $0x38] sm:$0xff]  ;;  %v2037_v56 = vld [vmem:[%s5380_s20] sm:$0xff] }
  0x61   : > { %4086 = vmatpush1.bf16.msra.mxu0 %v4085_v17  ;;  %4120 = vmatprep.subr.bf16.mxu1 %v4437_v0  ;;  %v1092_v17 = vld [vmem:[%s5371_s11 + $0x18] sm:$0xff]  ;;  %v4136_v63 = vpack.c.bf16 %v3528_v62, %v3527_v61  ;;  %v2041_v62 = vld [vmem:[%s5380_s20 + $0x20] sm:$0xff]  ;;  %p4369_p12 = pneg %p4368_p10 }
  0x62   : > { %4087 = vmatprep.subr.bf16.mxu0 %v4437_v0  ;;  %v4124_v18 = vpack.c.bf16 %v1092_v17, %v1091_v16 }
  0x63   : > { %p4376_p7 = pnand %p4375_p4, %p4369_p12 }
  0x65   : > { %4089 = vmatpush1.bf16.msra.mxu0 %v4088_v20  ;;  %v3510_v20 = vld [vmem:[%s5444_s10] ss:$0 sm:$0xff] }
  0x66   : > { %4090 = vmatprep.subr.bf16.mxu0 %v4437_v0 }
  0x69   : > { %4092 = vmatpush1.bf16.msra.mxu0 %v4091_v23  ;;  %v3532_v23 = vld [vmem:[%s5371_s11 + $0x20] sm:$0xff] }
  0x6a   : > { %4093 = vmatprep.subr.bf16.mxu0 %v4437_v0  ;;  %v4139_v30 = vpack.c.bf16 %v3533_v24, %v3532_v23  ;;  %v1754_v23 = vld [vmem:[#allocation2 + $0x10] sm:$0xff]  ;;  %v1755_v24 = vld [vmem:[#allocation2 + $0x18] sm:$0xff] }
  0x6d   : > { %4095 = vmatpush1.bf16.msra.mxu0 %v4094_v26 }
  0x6e   : > { %4096 = vmatprep.subr.bf16.mxu0 %v4437_v0 }
  0x71   : > { %4098 = vmatpush1.bf16.msra.mxu0 %v4097_v29 }
  0x72   : > { %4099 = vmatprep.subr.bf16.mxu0 %v4437_v0 }
  0x75   : > { %4101 = vmatpush1.bf16.msra.mxu0 %v4100_v32  ;;  %v3535_v32 = vld [vmem:[%s5371_s11 + $0x38] sm:$0xff] }
  0x76   : > { %4102 = vmatprep.subr.bf16.mxu0 %v4437_v0  ;;  %v4142_v34 = vpack.c.bf16 %v3535_v32, %v3534_v31 }
  0x79   : > { %4104 = vmatpush1.bf16.msra.mxu0 %v4103_v35 }
  0x7a   : > { %4105 = vmatprep.subr.bf16.mxu0 %v4437_v0 }
  0x7d   : > { %4107 = vmatpush1.bf16.msra.mxu0 %v4106_v38 }
  0x7e   : > { %4108 = vmatprep.subr.bf16.mxu0 %v4437_v0 }
  0x80   : > { %879 = vmatmul.mubr.f32.vlgmr.msra.gmra.mrb[0].mxu0 %v777_v12  ;;  %v3507_v12 = vld [vmem:[%s5442_s3] ss:$0 sm:$0xff] }
  0x81   : > { %4110 = vmatpush3.bf16.msra.mxu0 %v4109_v59  ;;  %3788 = vmatprep.mubr.msk.f32.mxu0 %vm4438_vm3, %v4439_v3  ;;  %v3526_v59 = vld [vmem:[%s5438_s25 + $0x28] sm:$0xff] }
  0x82   : > { %4111 = vmatprep.subr.bf16.mxu0 %v4437_v0  ;;  %v4133_v60 = vpack.c.bf16 %v3526_v59, %v3525_v58  ;;  %v2039_v58 = vld [vmem:[%s5380_s20 + $0x10] sm:$0xff] }
  0x85   : > { %4113 = vmatpush3.bf16.msra.mxu0 %v4112_v2 }
  0x86   : > { %3813 = vmatprep.subr.mxu0 %v4439_v3 }
 0x153   : > { %v880_v40 = vpop.f32.mrb[0].mxu0 }
 0x154   : > { %v881_v41 = vadd.f32 %v3504_v39, %v880_v40  ;;  %v882_v42 = vpop.f32.mrb[1].mxu0 }
 0x156   : > { %v886_v44 = vrot.slane %v881_v41, 7 }
 0x158   : > { %v889_v46 = vsel %vm888_vm1, %v884_v43, %v886_v44 }
 0x159   : > { %v4754_v47 = vadd.f32 %v890_v45, %v889_v46 }
 0x15b   : > { %v895_v48 = vsel %vm894_vm2, %v4754_v47, 0.0 }
 0x15c   : > { %896 = vadd.xlane.f32.xlu0 %v895_v48 }
 0x1e9   : > { %v897_v49 = vpop.xlane.xlu0 %896 }
 0x1ea   : > { %v899_v50 = vmul.f32 0.03125, %v897_v49 }
 0x1ec   : > { %v900_v51 = vsub.f32 %v4754_v47, %v899_v50  ;;  %v3518_v50 = vld [vmem:[%s5440_s26 + $0x20] sm:$0xff] }
 0x1ee   : > { %v901_v52 = vmul.f32 %v900_v51, %v900_v51 }
 0x1f0   : > { %v902_v53 = vsel %vm894_vm2, %v901_v52, 0.0 }
 0x1f1   : > { %903 = vadd.xlane.f32.xlu0 %v902_v53 }
 0x27e   : > { %v904_v4 = vpop.xlane.xlu0 %903 }
 0x27f   : > { %v905_v5 = vmul.f32 0.03125, %v904_v4 }
 0x281   : > { %v906_v6 = vadd.f32 1e-06, %v905_v5 }
 0x283   : > { %4308 = vrsqrt.f32 %v906_v6  ;;  %v3523_v6 = vld [vmem:[%s5443_s28 + $0x1] ss:$0 sm:$0xff] }
 0x28d   : > { %v4309_v7 = vpop.eup %4308 }
 0x28e   : > { %v908_v9 = vmul.f32 %v4309_v7, %v900_v51  ;;  %v3519_v51 = vld [vmem:[%s5440_s26 + $0x28] sm:$0xff]  ;;  %v3530_v7 = vld [vmem:[%s5444_s10 + $0x1] ss:$0 sm:$0xff] }
 0x28f   : > { %v4127_v53 = vpack.c.bf16 %v3519_v51, %v3518_v50  ;;  %v1948_v51 = vld [vmem:[%s5378_s18] sm:$0xff] }
 0x290   : > { %v915_v13 = vmul.f32 %v3506_v8, %v908_v9 }
 0x292   : > { %v4804_v15 = vadd.f32 %v3507_v12, %v915_v13  ;;  %v3537_v12 = vld [vmem:[%s5372_s12 + $0x1] ss:$0 sm:$0xff] }
 0x294   : > { %3789 = vmatmul.mubr.msk.f32.vlgmr.msra.gmra.mrb[2].mxu0 %vm934_vm4, %v4804_v15  ;;  %3800 = vmatmul.mubr.msk.f32.vlgmr.msra.gmra.mrb[0].mxu1 %vm934_vm4, %v4804_v15 }
 0x295   : > { %4122 = vmatpush3.bf16.msra.mxu1 %v4121_v14  ;;  %3810 = vmatprep.mubr.msk.f32.mxu1 %vm4438_vm3, %v4439_v3 }
 0x296   : > { %4123 = vmatprep.subr.bf16.mxu1 %v4437_v0  ;;  %3815 = vmatprep.mubr.msk.f32.mxu0 %vm4438_vm3, %v4439_v3 }
 0x299   : > { %4125 = vmatpush3.bf16.msra.mxu1 %v4124_v18 }
 0x29a   : > { %3818 = vmatprep.subr.mxu1 %v4439_v3 }
 0x29c   : > { %3811 = vmatmul.mubr.msk.f32.vlgmr.msra.gmra.mrb[2].mxu1 %vm934_vm4, %v4804_v15 }
 0x29d   : > { %3820 = vmatprep.mubr.msk.f32.mxu1 %vm4438_vm3, %v4439_v3 }
 0x367   : > { %v1004_v21 = vpop.f32.mrb[2].mxu0  ;;  %v1085_v22 = vpop.f32.mrb[0].mxu1 }
 0x368   : > { %v1005_v25 = vadd.f32 %v3508_v19, %v1004_v21  ;;  %v1086_v26 = vadd.f32 %v3510_v20, %v1085_v22  ;;  %v3790_v27 = vpop.f32.mrb[3].mxu0  ;;  %v3801_v28 = vpop.f32.mrb[1].mxu1 }
 0x369   : > { %v1338_v27 = vld [vmem:[#allocation2] sm:$0xff]  ;;  %v1339_v28 = vld [vmem:[#allocation2 + $0x8] sm:$0xff] }
 0x36a   : > { %v1170_v29 = vmul.f32 0.25, %v1005_v25  ;;  %3814 = vmatpush3.xpose.msk.msra.mxu0 %vm1171_vm5, %v1086_v26  ;;  %v4145_v25 = vpack.c.bf16 %v1755_v24, %v1754_v23  ;;  %v2051_v24 = vld [vmem:[%s5380_s20 + $0x70] sm:$0xff] }
 0x36b   : > { %4138 = vmatprep.subr.bf16.mxu0 %v4437_v0 }
 0x36d   : > { %3816 = vmatmul.mubr.msk.f32.vlgmr.msra.gmra.mrb[4].mxu0 %vm1171_vm5, %v1170_v29 }
 0x36e   : > { %4140 = vmatpush3.bf16.msra.mxu0 %v4139_v30  ;;  %3853 = vmatprep.mubr.msk.f32.mxu0 %vm4438_vm3, %v4439_v3  ;;  %v4148_v30 = vpack.c.bf16 %v1339_v28, %v1338_v27  ;;  %v3549_v27 = vld [vmem:[%s5379_s19] ss:$0 sm:$0xff] }
 0x36f   : > { %v1166_v35 = vpop.f32.mrb[2].mxu1  ;;  %4141 = vmatprep.subr.bf16.mxu0 %v4437_v0 }
 0x370   : > { %v1167_v36 = vadd.f32 %v3512_v33, %v1166_v35  ;;  %v3812_v37 = vpop.f32.mrb[3].mxu1 }
 0x371   : > { %v3545_v37 = vld [vmem:[%s5374_s14] ss:$0 sm:$0xff] }
 0x372   : > { %3819 = vmatpush3.msk.msra.mxu1 %vm1264_vm6, %v1167_v36  ;;  %4143 = vmatpush3.bf16.msra.mxu0 %v4142_v34 }
 0x373   : > { %4126 = vmatprep.subr.bf16.mxu1 %v4437_v0  ;;  %4144 = vmatprep.subr.bf16.mxu0 %v4437_v0 }
 0x375   : > { %3854 = vmatmul.mubr.msk.f32.vlgmr.msra.gmra.mrb[6].mxu0 %vm934_vm4, %v4804_v15 }
 0x376   : > { %3870 = vmatprep.mubr.msk.f32.mxu0 %vm4438_vm3, %v4439_v3  ;;  %4146 = vmatpush3.bf16.msra.mxu0 %v4145_v25  ;;  %v2052_v25 = vld [vmem:[%s5380_s20 + $0x78] sm:$0xff] }
 0x377   : > { %4150 = vmatprep.subr.bf16.mxu0 %v4437_v0 }
 0x440   : > { %v1244_v38 = vpop.f32.mrb[4].mxu0 }
 0x441   : > { %v3817_v39 = vpop.f32.mrb[5].mxu0  ;;  %v1249_v40 = vsel %vm1248_vm7, %v1244_v38, -inf }
 0x442   : > { %1250 = vmax.xlane.f32.xlu1 %v1249_v40  ;;  %v3546_v40 = vld [vmem:[%s5375_s15] ss:$0 sm:$0xff] }
 0x448   : > { %v1585_v41 = vpop.f32.mrb[6].mxu0 }
 0x449   : > { %v3855_v42 = vpop.f32.mrb[7].mxu0  ;;  %v1586_v14 = vadd.f32 %v3537_v12, %v1585_v41  ;;  %v2043_v12 = vld [vmem:[%s5380_s20 + $0x30] sm:$0xff] }
 0x4cf   : > { %v1251_v43 = vpop.xlane.xlu1 %1250 }
 0x4d0   : > { %v1252_v44 = vsub.f32 %v1244_v38, %v1251_v43 }
 0x4d2   : > { %v1253_v45 = vmul.f32 1.442695, %v1252_v44 }
 0x4d4   : > { %4310 = vpow2.f32 %v1253_v45 }
 0x4de   : > { %v4311_v46 = vpop.eup %4310 }
 0x4df   : > { %v1255_v48 = vsel %vm1248_vm7, %v4311_v46, 0.0 }
 0x4e0   : > { %1256 = vadd.xlane.f32.xlu1 %v1255_v48 }
 0x56d   : > { %v1257_v49 = vpop.xlane.xlu1 %1256 }
 0x56e   : > { %4312 = vrcp.f32 %v1257_v49 }
 0x578   : > { %v4313_v52 = vpop.eup %4312 }
 0x579   : > { %v1259_v54 = vmul.f32 %v4313_v52, %v4311_v46 }
 0x57b   : > { %3821 = vmatmul.mubr.msk.f32.vlgmr.msra.gmra.mrb[4].mxu1 %vm1260_vm8, %v1259_v54  ;;  %v1951_v54 = vld [vmem:[%s5378_s18 + $0x18] sm:$0xff] }
 0x57c   : > { %4128 = vmatpush3.bf16.msra.mxu1 %v4127_v53  ;;  %3831 = vmatprep.mubr.msk.f32.mxu1 %vm4438_vm3, %v4439_v3  ;;  %v1950_v53 = vld [vmem:[%s5378_s18 + $0x10] sm:$0xff] }
 0x57d   : > { %4129 = vmatprep.subr.bf16.mxu1 %v4437_v0  ;;  %v4154_v55 = vpack.c.bf16 %v1951_v54, %v1950_v53  ;;  %v3560_v53 = vld [vmem:[%s5440_s26 + $0x58] sm:$0xff] }
 0x580   : > { %4131 = vmatpush3.bf16.msra.mxu1 %v4130_v57  ;;  %v2038_v57 = vld [vmem:[%s5380_s20 + $0x8] sm:$0xff] }
 0x581   : > { %4132 = vmatprep.subr.bf16.mxu1 %v4437_v0  ;;  %v4157_v59 = vpack.c.bf16 %v2038_v57, %v2037_v56 }
 0x583   : > { %3832 = vmatmul.mubr.msk.f32.vlgmr.msra.gmra.mrb[6].mxu1 %vm934_vm4, %v4804_v15 }
 0x584   : > { %4134 = vmatpush3.bf16.msra.mxu1 %v4133_v60  ;;  %3842 = vmatprep.mubr.msk.f32.mxu1 %vm4438_vm3, %v4439_v3  ;;  %v2040_v60 = vld [vmem:[%s5380_s20 + $0x18] sm:$0xff] }
 0x585   : > { %4135 = vmatprep.subr.bf16.mxu1 %v4437_v0  ;;  %v4160_v61 = vpack.c.bf16 %v2040_v60, %v2039_v58 }
 0x588   : > { %4137 = vmatpush3.bf16.msra.mxu1 %v4136_v63  ;;  %v2042_v63 = vld [vmem:[%s5380_s20 + $0x28] sm:$0xff] }
 0x589   : > { %3856 = vmatprep.subr.mxu1 %v4439_v3 }
 0x58b   : > { %3843 = vmatmul.mubr.msk.f32.vlgmr.msra.gmra.mrb[8].mxu1 %vm934_vm4, %v4804_v15 }
 0x58c   : > { %3858 = vmatprep.mubr.msk.f32.mxu1 %vm4438_vm3, %v4439_v3 }
 0x64e   : > { %v1334_v1 = vpop.f32.mrb[4].mxu1 }
 0x64f   : > { %v3822_v2 = vpop.f32.mrb[5].mxu1 }
 0x656   : > { %v1419_v4 = vpop.f32.mrb[6].mxu1 }
 0x657   : > { %v3833_v5 = vpop.f32.mrb[7].mxu1  ;;  %v1420_v8 = vadd.f32 %v3523_v6, %v1419_v4 }
 0x659   : > { %v1589_v13 = vmul.f32 0.25, %v1420_v8 }
 0x65e   : > { %v1502_v9 = vpop.f32.mrb[8].mxu1 }
 0x65f   : > { %v1503_v10 = vadd.f32 %v3530_v7, %v1502_v9  ;;  %v3844_v11 = vpop.f32.mrb[9].mxu1  ;;  %v3547_v7 = vld [vmem:[%s5376_s16] ss:$0 sm:$0xff] }
 0x660   : > { %v3548_v9 = vld [vmem:[%s5377_s17] ss:$0 sm:$0xff] }
 0x661   : > { %3857 = vmatpush3.xpose.msk.msra.mxu1 %vm1171_vm5, %v1503_v10 }
 0x662   : > { %3861 = vmatprep.subr.mxu1 %v4439_v3 }
 0x664   : > { %3859 = vmatmul.mubr.msk.f32.vlgmr.msra.gmra.mrb[10].mxu1 %vm1171_vm5, %v1589_v13  ;;  %v2044_v13 = vld [vmem:[%s5380_s20 + $0x38] sm:$0xff] }
 0x665   : > { %3862 = vmatpush3.msk.msra.mxu1 %vm1264_vm6, %v1586_v14  ;;  %3863 = vmatprep.mubr.msk.f32.mxu1 %vm4438_vm3, %v4439_v3  ;;  %v4166_v14 = vpack.c.bf16 %v2044_v13, %v2043_v12  ;;  %v3574_v12 = vld [vmem:[%s5371_s11 + $0x58] sm:$0xff] }
 0x666   : > { %4147 = vmatprep.subr.bf16.mxu1 %v4437_v0 }
 0x737   : > { %v1662_v15 = vpop.f32.mrb[10].mxu1 }
 0x738   : > { %v3860_v16 = vpop.f32.mrb[11].mxu1  ;;  %v1666_v17 = vsel %vm1248_vm7, %v1662_v15, -inf }
 0x739   : > { %1667 = vmax.xlane.f32.xlu0 %v1666_v17  ;;  %v2046_v16 = vld [vmem:[%s5380_s20 + $0x48] sm:$0xff] }
 0x7c6   : > { %v1668_v18 = vpop.xlane.xlu0 %1667 }
 0x7c7   : > { %v1669_v19 = vsub.f32 %v1662_v15, %v1668_v18  ;;  %v2045_v15 = vld [vmem:[%s5380_s20 + $0x40] sm:$0xff]  ;;  %v2047_v18 = vld [vmem:[%s5380_s20 + $0x50] sm:$0xff] }
 0x7c8   : > { %v4169_v17 = vpack.c.bf16 %v2046_v16, %v2045_v15  ;;  %v3562_v16 = vld [vmem:[%s5443_s28 + $0x2] ss:$0 sm:$0xff] }
 0x7c9   : > { %v1670_v20 = vmul.f32 1.442695, %v1669_v19  ;;  %v2048_v19 = vld [vmem:[%s5380_s20 + $0x58] sm:$0xff] }
 0x7cb   : > { %4314 = vpow2.f32 %v1670_v20  ;;  %v4172_v20 = vpack.c.bf16 %v2048_v19, %v2047_v18 }
 0x7d5   : > { %v4315_v21 = vpop.eup %4314 }
 0x7d6   : > { %v1672_v22 = vsel %vm1248_vm7, %v4315_v21, 0.0 }
 0x7d7   : > { %1673 = vadd.xlane.f32.xlu1 %v1672_v22  ;;  %v2050_v22 = vld [vmem:[%s5380_s20 + $0x68] sm:$0xff] }
 0x864   : > { %v1674_v26 = vpop.xlane.xlu1 %1673 }
 0x865   : > { %4316 = vrcp.f32 %v1674_v26  ;;  %v4178_v26 = vpack.c.bf16 %v2052_v25, %v2051_v24 }
 0x86f   : > { %v4317_v29 = vpop.eup %4316 }
 0x870   : > { %v1676_v31 = vmul.f32 %v4317_v29, %v4315_v21  ;;  %v2049_v21 = vld [vmem:[%s5380_s20 + $0x60] sm:$0xff] }
 0x871   : > { %v4175_v23 = vpack.c.bf16 %v2050_v22, %v2049_v21  ;;  %v3583_v21 = vld [vmem:[%s5440_s26 + $0x68] sm:$0xff] }
 0x872   : > { %3864 = vmatmul.mubr.msk.f32.vlgmr.msra.gmra.mrb[12].mxu1 %vm1260_vm8, %v1676_v31 }
 0x873   : > { %4149 = vmatpush3.bf16.msra.mxu1 %v4148_v30  ;;  %3877 = vmatprep.mubr.msk.f32.mxu1 %vm4438_vm3, %v4439_v3 }
 0x874   : > { %4156 = vmatprep.subr.bf16.mxu1 %v4437_v0 }
 0x876   : > { %3878 = vmatmul.mubr.msk.f32.vlgmr.msra.gmra.mrb[14].mxu1 %vm1171_vm5, %v1334_v1  ;;  %v4163_v1 = vpack.c.bf16 %v2042_v63, %v2041_v62  ;;  %v3565_v62 = vld [vmem:[%s5438_s25 + $0x48] sm:$0xff]  ;;  %v3556_v63 = vld [vmem:[%s5442_s3 + $0x1] ss:$0 sm:$0xff]  ;;  %s5446_s3 = sld [smem:[#allocation27_spill]] }
 0x877   : > { %3923 = vmatprep.mubr.msk.f32.mxu1 %vm4438_vm3, %v4439_v3  ;;  %4158 = vmatpush3.bf16.msra.mxu1 %v4157_v59  ;;  %v3555_v59 = vld [vmem:[%s5441_s1 + $0x1] ss:$0 sm:$0xff] }
 0x878   : > { %4159 = vmatprep.subr.bf16.mxu1 %v4437_v0 }
 0x87b   : > { %4161 = vmatpush3.bf16.msra.mxu1 %v4160_v61  ;;  %v3564_v61 = vld [vmem:[%s5438_s25 + $0x40] sm:$0xff] }
 0x87c   : > { %4162 = vmatprep.subr.bf16.mxu1 %v4437_v0 }
 0x87f   : > { %4164 = vmatpush3.bf16.msra.mxu1 %v4163_v1 }
 0x880   : > { %4165 = vmatprep.subr.bf16.mxu1 %v4437_v0 }
 0x883   : > { %4167 = vmatpush3.bf16.msra.mxu1 %v4166_v14 }
 0x884   : > { %4168 = vmatprep.subr.bf16.mxu1 %v4437_v0 }
 0x887   : > { %4170 = vmatpush3.bf16.msra.mxu1 %v4169_v17  ;;  %v3569_v17 = vld [vmem:[%s5444_s10 + $0x2] ss:$0 sm:$0xff] }
 0x888   : > { %4171 = vmatprep.subr.bf16.mxu1 %v4437_v0 }
 0x88b   : > { %4173 = vmatpush3.bf16.msra.mxu1 %v4172_v20  ;;  %v3582_v20 = vld [vmem:[%s5440_s26 + $0x60] sm:$0xff] }
 0x88c   : > { %4174 = vmatprep.subr.bf16.mxu1 %v4437_v0  ;;  %v4199_v24 = vpack.c.bf16 %v3583_v21, %v3582_v20 }
 0x88f   : > { %4176 = vmatpush3.bf16.msra.mxu1 %v4175_v23 }
 0x890   : > { %4177 = vmatprep.subr.bf16.mxu1 %v4437_v0 }
 0x893   : > { %4179 = vmatpush3.bf16.msra.mxu1 %v4178_v26  ;;  %v3584_v26 = vld [vmem:[%s5440_s26 + $0x70] sm:$0xff] }
 0x894   : > { %3964 = vmatprep.subr.mxu1 %v4439_v3 }
 0x945   : > { %v1749_v32 = vpop.f32.mrb[12].mxu1 }
 0x946   : > { %v3865_v33 = vpop.f32.mrb[13].mxu1  ;;  %3871 = vmatmul.mubr.msk.f32.vlgmr.msra.gmra.mrb[8].mxu0 %vm1171_vm5, %v1749_v32 }
 0x947   : > { %3888 = vmatprep.mubr.msk.f32.mxu0 %vm4438_vm3, %v4439_v3 }
 0x949   : > { %v1898_v34 = vpop.f32.mrb[14].mxu1 }
 0x94a   : > { %v3879_v35 = vpop.f32.mrb[15].mxu1 }
 0xa19   : > { %v1825_v36 = vpop.f32.mrb[8].mxu0 }
 0xa1a   : > { %v1899_v38 = vadd.f32 %v1898_v34, %v1825_v36  ;;  %v3872_v39 = vpop.f32.mrb[9].mxu0  ;;  %v3551_v36 = vld [vmem:[%s5381_s21] ss:$0 sm:$0xff] }
 0xa1c   : > { %v1909_v41 = vadd.f32 %v3545_v37, %v1899_v38  ;;  %v3552_v38 = vld [vmem:[%s5382_s22] ss:$0 sm:$0xff] }
 0xa1e   : > { %v1917_v42 = vmul.f32 %v3546_v40, %v1909_v41 }
 0xa20   : > { %v4937_v43 = vadd.f32 %v1917_v42, %v4754_v47  ;;  %v1949_v47 = vld [vmem:[%s5378_s18 + $0x8] sm:$0xff] }
 0xa21   : > { %v4151_v52 = vpack.c.bf16 %v1949_v47, %v1948_v51  ;;  %v3557_v51 = vld [vmem:[%s5440_s26 + $0x40] sm:$0xff] }
 0xa22   : > { %v1921_v44 = vsel %vm894_vm2, %v4937_v43, 0.0 }
 0xa23   : > { %1922 = vadd.xlane.f32.xlu0 %v1921_v44  ;;  %4152 = vmatpush3.bf16.msra.mxu0 %v4151_v52  ;;  %v3559_v52 = vld [vmem:[%s5440_s26 + $0x50] sm:$0xff] }
 0xa24   : > { %4153 = vmatprep.subr.bf16.mxu0 %v4437_v0  ;;  %v4184_v54 = vpack.c.bf16 %v3560_v53, %v3559_v52  ;;  %v3589_v53 = vld [vmem:[%s5438_s25 + $0x60] sm:$0xff] }
 0xa27   : > { %4155 = vmatpush3.bf16.msra.mxu0 %v4154_v55 }
 0xa28   : > { %4180 = vmatprep.subr.bf16.mxu0 %v4437_v0 }
 0xab0   : > { %v1923_v45 = vpop.xlane.xlu0 %1922 }
 0xab1   : > { %v1924_v46 = vmul.f32 0.03125, %v1923_v45 }
 0xab3   : > { %v1925_v48 = vsub.f32 %v4937_v43, %v1924_v46 }
 0xab5   : > { %v1926_v49 = vmul.f32 %v1925_v48, %v1925_v48 }
 0xab7   : > { %v1927_v50 = vsel %vm894_vm2, %v1926_v49, 0.0 }
 0xab8   : > { %1928 = vadd.xlane.f32.xlu1 %v1927_v50 }
 0xb45   : > { %v1929_v2 = vpop.xlane.xlu1 %1928 }
 0xb46   : > { %v1930_v4 = vmul.f32 0.03125, %v1929_v2  ;;  %v4187_v2 = vpack.c.bf16 %v3565_v62, %v3564_v61 }
 0xb48   : > { %v1931_v5 = vadd.f32 1e-06, %v1930_v4 }
 0xb4a   : > { %4318 = vrsqrt.f32 %v1931_v5  ;;  %v3566_v5 = vld [vmem:[%s5438_s25 + $0x50] sm:$0xff] }
 0xb54   : > { %v4319_v6 = vpop.eup %4318 }
 0xb55   : > { %v1933_v8 = vmul.f32 %v4319_v6, %v1925_v48  ;;  %v3567_v6 = vld [vmem:[%s5438_s25 + $0x58] sm:$0xff] }
 0xb57   : > { %v1940_v10 = vmul.f32 %v3547_v7, %v1933_v8  ;;  %v4190_v7 = vpack.c.bf16 %v3567_v6, %v3566_v5  ;;  %v3571_v8 = vld [vmem:[%s5371_s11 + $0x40] sm:$0xff] }
 0xb59   : > { %v1947_v11 = vadd.f32 %v3548_v9, %v1940_v10  ;;  %v3572_v9 = vld [vmem:[%s5371_s11 + $0x48] sm:$0xff] }
 0xb5a   : > { %v4193_v10 = vpack.c.bf16 %v3572_v9, %v3571_v8 }
 0xb5b   : > { %3889 = vmatmul.mubr.msk.f32.vlgmr.msra.gmra.mrb[10].mxu0 %vm934_vm4, %v1947_v11  ;;  %v3573_v11 = vld [vmem:[%s5371_s11 + $0x50] sm:$0xff] }
 0xb5c   : > { %3934 = vmatprep.mubr.msk.f32.mxu0 %vm4438_vm3, %v4439_v3  ;;  %v4196_v13 = vpack.c.bf16 %v3574_v12, %v3573_v11 }
 0xc2e   : > { %v2028_v28 = vpop.f32.mrb[10].mxu0 }
 0xc2f   : > { %v2029_v29 = vadd.f32 %v3549_v27, %v2028_v28  ;;  %v3890_v30 = vpop.f32.mrb[11].mxu0  ;;  %v3585_v27 = vld [vmem:[%s5440_s26 + $0x78] sm:$0xff]  ;;  %v3576_v28 = vld [vmem:[%s5372_s12 + $0x2] ss:$0 sm:$0xff] }
 0xc31   : > { %v2033_v31 = vmul.f32 0.70710677, %v2029_v29  ;;  %v2032_v33 = vmul.f32 0.5, %v2029_v29  ;;  %v4202_v29 = vpack.c.bf16 %v3585_v27, %v3584_v26 }
 0xc33   : > { %4320 = verf.f32 %v2033_v31  ;;  %v3596_v31 = vld [vmem:[%s5371_s11 + $0x60] sm:$0xff] }
 0xc3d   : > { %v4321_v32 = vpop.eup %4320 }
 0xc3e   : > { %v2035_v34 = vadd.f32 1.0, %v4321_v32  ;;  %v3597_v32 = vld [vmem:[%s5371_s11 + $0x68] sm:$0xff] }
 0xc40   : > { %v2036_v35 = vmul.f32 %v2035_v34, %v2032_v33 }
 0xc42   : > { %3924 = vmatmul.mubr.f32.vlgmr.msra.gmra.mrb[16].mxu1 %v2036_v35  ;;  %v4211_v35 = vpack.c.bf16 %v3597_v32, %v3596_v31  ;;  %v3610_v32 = vld [vmem:[%s5374_s14 + $0x1] ss:$0 sm:$0xff] }
 0xc43   : > { %3966 = vmatprep.mubr.msk.f32.mxu1 %vm4438_vm3, %v4439_v3 }
 0xd15   : > { %v2126_v37 = vpop.f32.mrb[16].mxu1 }
 0xd16   : > { %v2127_v39 = vadd.f32 %v3551_v36, %v2126_v37  ;;  %v3925_v40 = vpop.f32.mrb[17].mxu1  ;;  %v3598_v36 = vld [vmem:[%s5371_s11 + $0x70] sm:$0xff]  ;;  %v3599_v37 = vld [vmem:[%s5371_s11 + $0x78] sm:$0xff] }
 0xd18   : > { %v2137_v41 = vmul.f32 %v3552_v38, %v2127_v39  ;;  %v4214_v38 = vpack.c.bf16 %v3599_v37, %v3598_v36 }
 0xd1a   : > { %v5034_v42 = vadd.f32 %v2137_v41, %v4937_v43  ;;  %v3558_v43 = vld [vmem:[%s5440_s26 + $0x48] sm:$0xff] }
 0xd1b   : > { %v4181_v47 = vpack.c.bf16 %v3558_v43, %v3557_v51 }
 0xd1c   : > { %v2143_v44 = vsel %vm894_vm2, %v5034_v42, 0.0 }
 0xd1d   : > { %2144 = vadd.xlane.f32.xlu0 %v2143_v44  ;;  %4182 = vmatpush3.bf16.msra.mxu0 %v4181_v47 }
 0xd1e   : > { %4183 = vmatprep.subr.bf16.mxu0 %v4437_v0 }
 0xd21   : > { %4185 = vmatpush3.bf16.msra.mxu0 %v4184_v54  ;;  %v3590_v54 = vld [vmem:[%s5438_s25 + $0x68] sm:$0xff] }
 0xd22   : > { %4186 = vmatprep.subr.bf16.mxu0 %v4437_v0 }
 0xdaa   : > { %v2145_v45 = vpop.xlane.xlu0 %2144 }
 0xdab   : > { %v2146_v46 = vmul.f32 0.03125, %v2145_v45 }
 0xdad   : > { %v2147_v48 = vsub.f32 %v5034_v42, %v2146_v46 }
 0xdaf   : > { %v2148_v49 = vmul.f32 %v2147_v48, %v2147_v48 }
 0xdb1   : > { %v2149_v50 = vsel %vm894_vm2, %v2148_v49, 0.0 }
 0xdb2   : > { %2150 = vadd.xlane.f32.xlu1 %v2149_v50 }
 0xe3f   : > { %v2151_v55 = vpop.xlane.xlu1 %2150 }
 0xe40   : > { %v2152_v56 = vmul.f32 0.03125, %v2151_v55 }
 0xe42   : > { %v2153_v57 = vadd.f32 1e-06, %v2152_v56  ;;  %v4205_v56 = vpack.c.bf16 %v3590_v54, %v3589_v53  ;;  %v3627_v54 = vld [vmem:[%s5380_s20 + $0x98] sm:$0xff] }
 0xe44   : > { %4322 = vrsqrt.f32 %v2153_v57 }
 0xe4e   : > { %v4323_v58 = vpop.eup %4322 }
 0xe4f   : > { %v2155_v60 = vmul.f32 %v4323_v58, %v2147_v48  ;;  %v3591_v58 = vld [vmem:[%s5438_s25 + $0x70] sm:$0xff] }
 0xe51   : > { %v2162_v1 = vmul.f32 %v3555_v59, %v2155_v60  ;;  %v3592_v59 = vld [vmem:[%s5438_s25 + $0x78] sm:$0xff] }
 0xe52   : > { %v4208_v60 = vpack.c.bf16 %v3592_v59, %v3591_v58 }
 0xe53   : > { %v5066_v4 = vadd.f32 %v3556_v63, %v2162_v1  ;;  %v3587_v63 = vld [vmem:[%s5443_s28 + $0x3] ss:$0 sm:$0xff] }
 0xe54   : > { %v3594_v1 = vld [vmem:[%s5444_s10 + $0x3] ss:$0 sm:$0xff]  ;;  %s5317_s10 = scalar_lea.hbm %s5446_s3, %s3644_s5 }
 0xe55   : > { %3935 = vmatmul.mubr.msk.f32.vlgmr.msra.gmra.mrb[12].mxu0 %vm934_vm4, %v5066_v4 }
 0xe56   : > { %4188 = vmatpush3.bf16.msra.mxu0 %v4187_v2  ;;  %3945 = vmatprep.mubr.msk.f32.mxu0 %vm4438_vm3, %v4439_v3 }
 0xe57   : > { %4189 = vmatprep.subr.bf16.mxu0 %v4437_v0 }
 0xe5a   : > { %4191 = vmatpush3.bf16.msra.mxu0 %v4190_v7 }
 0xe5b   : > { %4192 = vmatprep.subr.bf16.mxu0 %v4437_v0 }
 0xe5d   : > { %3946 = vmatmul.mubr.msk.f32.vlgmr.msra.gmra.mrb[14].mxu0 %vm934_vm4, %v5066_v4 }
 0xe5e   : > { %4194 = vmatpush3.bf16.msra.mxu0 %v4193_v10  ;;  %3956 = vmatprep.mubr.msk.f32.mxu0 %vm4438_vm3, %v4439_v3 }
 0xe5f   : > { %4195 = vmatprep.subr.bf16.mxu0 %v4437_v0 }
 0xe62   : > { %4197 = vmatpush3.bf16.msra.mxu0 %v4196_v13 }
 0xe63   : > { %3959 = vmatprep.subr.mxu0 %v4439_v3 }
 0xe65   : > { %3957 = vmatmul.mubr.msk.f32.vlgmr.msra.gmra.mrb[16].mxu0 %vm934_vm4, %v5066_v4 }
 0xe66   : > { %3961 = vmatprep.mubr.msk.f32.mxu0 %vm4438_vm3, %v4439_v3 }
 0xf28   : > { %v2252_v14 = vpop.f32.mrb[12].mxu0 }
 0xf29   : > { %v3936_v15 = vpop.f32.mrb[13].mxu0  ;;  %v2253_v18 = vadd.f32 %v3562_v16, %v2252_v14 }
 0xf2b   : > { %v2422_v25 = vmul.f32 0.25, %v2253_v18  ;;  %v3003_v18 = vld [vmem:[#allocation2 + $0x30] sm:$0xff] }
 0xf30   : > { %v2335_v19 = vpop.f32.mrb[14].mxu0 }
 0xf31   : > { %v2336_v22 = vadd.f32 %v3569_v17, %v2335_v19  ;;  %v3947_v23 = vpop.f32.mrb[15].mxu0  ;;  %v3004_v19 = vld [vmem:[#allocation2 + $0x38] sm:$0xff] }
 0xf32   : > { %v4217_v20 = vpack.c.bf16 %v3004_v19, %v3003_v18  ;;  %v2588_v23 = vld [vmem:[#allocation2 + $0x28] sm:$0xff]  ;;  %v3638_v18 = vld [vmem:[%s5380_s20 + $0xf0] sm:$0xff]  ;;  %v3639_v19 = vld [vmem:[%s5380_s20 + $0xf8] sm:$0xff] }
 0xf33   : > { %3960 = vmatpush3.xpose.msk.msra.mxu0 %vm1171_vm5, %v2336_v22  ;;  %v2587_v22 = vld [vmem:[#allocation2 + $0x20] sm:$0xff] }
 0xf34   : > { %4198 = vmatprep.subr.bf16.mxu0 %v4437_v0 }
 0xf36   : > { %3962 = vmatmul.mubr.msk.f32.vlgmr.msra.gmra.mrb[18].mxu0 %vm1171_vm5, %v2422_v25  ;;  %v4220_v25 = vpack.c.bf16 %v2588_v23, %v2587_v22 }
 0xf37   : > { %4200 = vmatpush3.bf16.msra.mxu0 %v4199_v24  ;;  %3977 = vmatprep.mubr.msk.f32.mxu0 %vm4438_vm3, %v4439_v3 }
 0xf38   : > { %v2418_v30 = vpop.f32.mrb[16].mxu0  ;;  %4201 = vmatprep.subr.bf16.mxu0 %v4437_v0 }
 0xf39   : > { %v2419_v33 = vadd.f32 %v3576_v28, %v2418_v30  ;;  %v3958_v34 = vpop.f32.mrb[17].mxu0 }
 0xf3b   : > { %3965 = vmatpush3.msk.msra.mxu1 %vm1264_vm6, %v2419_v33  ;;  %4203 = vmatpush3.bf16.msra.mxu0 %v4202_v29 }
 0xf3c   : > { %4210 = vmatprep.subr.bf16.mxu0 %v4437_v0  ;;  %4204 = vmatprep.subr.bf16.mxu1 %v4437_v0 }
 0xf3e   : > { %3978 = vmatmul.mubr.msk.f32.vlgmr.msra.gmra.mrb[20].mxu0 %vm934_vm4, %v5066_v4 }
 0xf3f   : > { %4212 = vmatpush3.bf16.msra.mxu0 %v4211_v35  ;;  %3999 = vmatprep.mubr.msk.f32.mxu0 %vm4438_vm3, %v4439_v3  ;;  %v3612_v35 = vld [vmem:[%s5375_s15 + $0x1] ss:$0 sm:$0xff] }
 0xf40   : > { %4213 = vmatprep.subr.bf16.mxu0 %v4437_v0 }
 0xf43   : > { %4215 = vmatpush3.bf16.msra.mxu0 %v4214_v38 }
 0xf44   : > { %4216 = vmatprep.subr.bf16.mxu0 %v4437_v0 }
 0xf46   : > { %4000 = vmatmul.mubr.msk.f32.vlgmr.msra.gmra.mrb[22].mxu0 %vm934_vm4, %v5066_v4 }
 0xf47   : > { %4016 = vmatprep.mubr.msk.f32.mxu0 %vm4438_vm3, %v4439_v3  ;;  %4218 = vmatpush3.bf16.msra.mxu0 %v4217_v20  ;;  %v4250_v20 = vpack.c.bf16 %v3639_v19, %v3638_v18 }
 0xf48   : > { %4222 = vmatprep.subr.bf16.mxu0 %v4437_v0 }
0x1009   : > { %v2495_v39 = vpop.f32.mrb[18].mxu0 }
0x100a   : > { %v3963_v40 = vpop.f32.mrb[19].mxu0  ;;  %v2499_v41 = vsel %vm1248_vm7, %v2495_v39, -inf }
0x100b   : > { %2500 = vmax.xlane.f32.xlu0 %v2499_v41 }
0x1011   : > { %v2668_v44 = vpop.f32.mrb[20].mxu0 }
0x1012   : > { %v3979_v45 = vpop.f32.mrb[21].mxu0  ;;  %v2669_v2 = vadd.f32 %v3587_v63, %v2668_v44  ;;  %v3615_v63 = vld [vmem:[%s5376_s16 + $0x1] ss:$0 sm:$0xff] }
0x1014   : > { %v2838_v8 = vmul.f32 0.25, %v2669_v2  ;;  %v3616_v2 = vld [vmem:[%s5377_s17 + $0x1] ss:$0 sm:$0xff] }
0x1019   : > { %v2834_v46 = vpop.f32.mrb[22].mxu0 }
0x101a   : > { %v4001_v48 = vpop.f32.mrb[23].mxu0 }
0x1098   : > { %v2501_v49 = vpop.xlane.xlu0 %2500 }
0x1099   : > { %v2502_v50 = vsub.f32 %v2495_v39, %v2501_v49  ;;  %v3619_v49 = vld [vmem:[%s5378_s18 + $0x30] sm:$0xff] }
0x109b   : > { %v2503_v51 = vmul.f32 1.442695, %v2502_v50  ;;  %v3620_v50 = vld [vmem:[%s5378_s18 + $0x38] sm:$0xff] }
0x109d   : > { %4324 = vpow2.f32 %v2503_v51  ;;  %v4226_v51 = vpack.c.bf16 %v3620_v50, %v3619_v49  ;;  %v3398_v49 = vld [vmem:[%s5445_s9] sm:$0x1] }
0x10a7   : > { %v4325_v43 = vpop.eup %4324 }
0x10a8   : > { %v2505_v47 = vsel %vm1248_vm7, %v4325_v43, 0.0 }
0x10a9   : > { %2506 = vadd.xlane.f32.xlu1 %v2505_v47  ;;  %v3625_v47 = vld [vmem:[%s5380_s20 + $0x88] sm:$0xff] }
0x1136   : > { %v2507_v52 = vpop.xlane.xlu1 %2506 }
0x1137   : > { %4326 = vrcp.f32 %v2507_v52  ;;  %v3626_v52 = vld [vmem:[%s5380_s20 + $0x90] sm:$0xff] }
0x1141   : > { %v4327_v55 = vpop.eup %4326 }
0x1142   : > { %v2509_v57 = vmul.f32 %v4327_v55, %v4325_v43  ;;  %v3624_v43 = vld [vmem:[%s5380_s20 + $0x80] sm:$0xff]  ;;  %v4232_v55 = vpack.c.bf16 %v3627_v54, %v3626_v52 }
0x1143   : > { %v4229_v53 = vpack.c.bf16 %v3625_v47, %v3624_v43 }
0x1144   : > { %3967 = vmatmul.mubr.msk.f32.vlgmr.msra.gmra.mrb[18].mxu1 %vm1260_vm8, %v2509_v57  ;;  %v3629_v57 = vld [vmem:[%s5380_s20 + $0xa8] sm:$0xff] }
0x1145   : > { %4206 = vmatpush3.bf16.msra.mxu1 %v4205_v56  ;;  %3988 = vmatprep.mubr.msk.f32.mxu1 %vm4438_vm3, %v4439_v3  ;;  %v3628_v56 = vld [vmem:[%s5380_s20 + $0xa0] sm:$0xff] }
0x1146   : > { %4207 = vmatprep.subr.bf16.mxu1 %v4437_v0  ;;  %v4235_v58 = vpack.c.bf16 %v3629_v57, %v3628_v56 }
0x1149   : > { %4209 = vmatpush3.bf16.msra.mxu1 %v4208_v60 }
0x114a   : > { %4002 = vmatprep.subr.mxu1 %v4439_v3 }
0x114c   : > { %3989 = vmatmul.mubr.msk.f32.vlgmr.msra.gmra.mrb[20].mxu1 %vm934_vm4, %v5066_v4  ;;  %v3601_v4 = vld [vmem:[%s5372_s12 + $0x3] ss:$0 sm:$0xff] }
0x114d   : > { %4004 = vmatprep.mubr.msk.f32.mxu1 %vm4438_vm3, %v4439_v3  ;;  %v2835_v9 = vadd.f32 %v3601_v4, %v2834_v46  ;;  %v3617_v46 = vld [vmem:[%s5378_s18 + $0x20] sm:$0xff]  ;;  %v3631_v4 = vld [vmem:[%s5380_s20 + $0xb8] sm:$0xff] }
0x1217   : > { %v2582_v61 = vpop.f32.mrb[18].mxu1 }
0x1218   : > { %v3968_v62 = vpop.f32.mrb[19].mxu1 }
0x121f   : > { %v2751_v5 = vpop.f32.mrb[20].mxu1 }
0x1220   : > { %v2752_v6 = vadd.f32 %v3594_v1, %v2751_v5  ;;  %v3990_v7 = vpop.f32.mrb[21].mxu1 }
0x1221   : > { %v3630_v7 = vld [vmem:[%s5380_s20 + $0xb0] sm:$0xff] }
0x1222   : > { %4003 = vmatpush3.xpose.msk.msra.mxu1 %vm1171_vm5, %v2752_v6 }
0x1223   : > { %4007 = vmatprep.subr.mxu1 %v4439_v3 }
0x1225   : > { %4005 = vmatmul.mubr.msk.f32.vlgmr.msra.gmra.mrb[22].mxu1 %vm1171_vm5, %v2838_v8  ;;  %v4238_v8 = vpack.c.bf16 %v3631_v4, %v3630_v7 }
0x1226   : > { %4008 = vmatpush3.msk.msra.mxu1 %vm1264_vm6, %v2835_v9  ;;  %4009 = vmatprep.mubr.msk.f32.mxu1 %vm4438_vm3, %v4439_v3  ;;  %v3632_v9 = vld [vmem:[%s5380_s20 + $0xc0] sm:$0xff] }
0x1227   : > { %4219 = vmatprep.subr.bf16.mxu1 %v4437_v0 }
0x12f8   : > { %v2911_v10 = vpop.f32.mrb[22].mxu1 }
0x12f9   : > { %v4006_v11 = vpop.f32.mrb[23].mxu1  ;;  %v2915_v12 = vsel %vm1248_vm7, %v2911_v10, -inf }
0x12fa   : > { %2916 = vmax.xlane.f32.xlu0 %v2915_v12  ;;  %v3634_v12 = vld [vmem:[%s5380_s20 + $0xd0] sm:$0xff] }
0x1387   : > { %v2917_v13 = vpop.xlane.xlu0 %2916 }
0x1388   : > { %v2918_v14 = vsub.f32 %v2911_v10, %v2917_v13  ;;  %v3633_v10 = vld [vmem:[%s5380_s20 + $0xc8] sm:$0xff]  ;;  %v3635_v13 = vld [vmem:[%s5380_s20 + $0xd8] sm:$0xff] }
0x1389   : > { %v4241_v11 = vpack.c.bf16 %v3633_v10, %v3632_v9 }
0x138a   : > { %v2919_v15 = vmul.f32 1.442695, %v2918_v14  ;;  %v4244_v14 = vpack.c.bf16 %v3635_v13, %v3634_v12 }
0x138c   : > { %4328 = vpow2.f32 %v2919_v15  ;;  %v3636_v15 = vld [vmem:[%s5380_s20 + $0xe0] sm:$0xff] }
0x1396   : > { %v4329_v16 = vpop.eup %4328 }
0x1397   : > { %v2921_v17 = vsel %vm1248_vm7, %v4329_v16, 0.0 }
0x1398   : > { %2922 = vadd.xlane.f32.xlu1 %v2921_v17 }
0x1425   : > { %v2923_v21 = vpop.xlane.xlu1 %2922 }
0x1426   : > { %4330 = vrcp.f32 %v2923_v21  ;;  %v3622_v21 = vld [vmem:[%s5379_s19 + $0x1] ss:$0 sm:$0xff] }
0x1430   : > { %v4331_v24 = vpop.eup %4330 }
0x1431   : > { %v2925_v26 = vmul.f32 %v4331_v24, %v4329_v16  ;;  %v3637_v16 = vld [vmem:[%s5380_s20 + $0xe8] sm:$0xff] }
0x1432   : > { %v4247_v17 = vpack.c.bf16 %v3637_v16, %v3636_v15 }
0x1433   : > { %4010 = vmatmul.mubr.msk.f32.vlgmr.msra.gmra.mrb[24].mxu1 %vm1260_vm8, %v2925_v26 }
0x1434   : > { %4221 = vmatpush3.bf16.msra.mxu1 %v4220_v25  ;;  %4023 = vmatprep.mubr.msk.f32.mxu1 %vm4438_vm3, %v4439_v3 }
0x1435   : > { %4228 = vmatprep.subr.bf16.mxu1 %v4437_v0 }
0x1437   : > { %4024 = vmatmul.mubr.msk.f32.vlgmr.msra.gmra.mrb[26].mxu1 %vm1171_vm5, %v2582_v61 }
0x1438   : > { %4069 = vmatprep.mubr.msk.f32.mxu1 %vm4438_vm3, %v4439_v3  ;;  %4230 = vmatpush3.bf16.msra.mxu1 %v4229_v53 }
0x1439   : > { %4231 = vmatprep.subr.bf16.mxu1 %v4437_v0 }
0x143c   : > { %4233 = vmatpush3.bf16.msra.mxu1 %v4232_v55 }
0x143d   : > { %4234 = vmatprep.subr.bf16.mxu1 %v4437_v0 }
0x1440   : > { %4236 = vmatpush3.bf16.msra.mxu1 %v4235_v58 }
0x1441   : > { %4237 = vmatprep.subr.bf16.mxu1 %v4437_v0 }
0x1444   : > { %4239 = vmatpush3.bf16.msra.mxu1 %v4238_v8 }
0x1445   : > { %4240 = vmatprep.subr.bf16.mxu1 %v4437_v0 }
0x1448   : > { %4242 = vmatpush3.bf16.msra.mxu1 %v4241_v11 }
0x1449   : > { %4243 = vmatprep.subr.bf16.mxu1 %v4437_v0 }
0x144c   : > { %4245 = vmatpush3.bf16.msra.mxu1 %v4244_v14 }
0x144d   : > { %4246 = vmatprep.subr.bf16.mxu1 %v4437_v0 }
0x1450   : > { %4248 = vmatpush3.bf16.msra.mxu1 %v4247_v17 }
0x1451   : > { %4249 = vmatprep.subr.bf16.mxu1 %v4437_v0 }
0x1454   : > { %4251 = vmatpush3.bf16.msra.mxu1 %v4250_v20 }
0x1506   : > { %v2998_v27 = vpop.f32.mrb[24].mxu1 }
0x1507   : > { %v4011_v28 = vpop.f32.mrb[25].mxu1  ;;  %4017 = vmatmul.mubr.msk.f32.vlgmr.msra.gmra.mrb[24].mxu0 %vm1171_vm5, %v2998_v27 }
0x1508   : > { %4034 = vmatprep.mubr.msk.f32.mxu0 %vm4438_vm3, %v4439_v3 }
0x150a   : > { %v3147_v29 = vpop.f32.mrb[26].mxu1 }
0x150b   : > { %v4025_v30 = vpop.f32.mrb[27].mxu1 }
0x15da   : > { %v3074_v31 = vpop.f32.mrb[24].mxu0 }
0x15db   : > { %v3148_v33 = vadd.f32 %v3147_v29, %v3074_v31  ;;  %v4018_v34 = vpop.f32.mrb[25].mxu0  ;;  %v3641_v29 = vld [vmem:[%s5381_s21 + $0x1] ss:$0 sm:$0xff] }
0x15dc   : > { %v3643_v31 = vld [vmem:[%s5382_s22 + $0x1] ss:$0 sm:$0xff] }
0x15dd   : > { %v3159_v36 = vadd.f32 %v3610_v32, %v3148_v33 }
0x15df   : > { %v3168_v37 = vmul.f32 %v3612_v35, %v3159_v36 }
0x15e1   : > { %v5213_v38 = vadd.f32 %v3168_v37, %v5034_v42  ;;  %v3618_v42 = vld [vmem:[%s5378_s18 + $0x28] sm:$0xff] }
0x15e2   : > { %v4223_v48 = vpack.c.bf16 %v3618_v42, %v3617_v46 }
0x15e3   : > { %v3174_v3 = vsel %vm894_vm2, %v5213_v38, 0.0 }
0x15e4   : > { %3175 = vadd.xlane.f32.xlu0 %v3174_v3  ;;  %4224 = vmatpush3.bf16.msra.mxu0 %v4223_v48 }
0x15e5   : > { %4225 = vmatprep.subr.bf16.mxu0 %v4437_v0 }
0x15e8   : > { %4227 = vmatpush3.bf16.msra.mxu0 %v4226_v51 }
0x1671   : > { %v3176_v39 = vpop.xlane.xlu0 %3175 }
0x1672   : > { %v3177_v40 = vmul.f32 0.03125, %v3176_v39 }
0x1674   : > { %v3178_v41 = vsub.f32 %v5213_v38, %v3177_v40 }
0x1676   : > { %v3179_v44 = vmul.f32 %v3178_v41, %v3178_v41 }
0x1678   : > { %v3180_v45 = vsel %vm894_vm2, %v3179_v44, 0.0 }
0x1679   : > { %3181 = vadd.xlane.f32.xlu1 %v3180_v45 }
0x1706   : > { %v3182_v59 = vpop.xlane.xlu1 %3181 }
0x1707   : > { %v3183_v60 = vmul.f32 0.03125, %v3182_v59 }
0x1709   : > { %v3184_v61 = vadd.f32 1e-06, %v3183_v60 }
0x170b   : > { %4332 = vrsqrt.f32 %v3184_v61 }
0x1715   : > { %v4333_v62 = vpop.eup %4332 }
0x1716   : > { %v3186_v1 = vmul.f32 %v4333_v62, %v3178_v41 }
0x1718   : > { %v3193_v5 = vmul.f32 %v3615_v63, %v3186_v1 }
0x171a   : > { %v3200_v6 = vadd.f32 %v3616_v2, %v3193_v5 }
0x171c   : > { %4035 = vmatmul.mubr.msk.f32.vlgmr.msra.gmra.mrb[26].mxu0 %vm934_vm4, %v3200_v6 }
0x17ef   : > { %v3283_v22 = vpop.f32.mrb[26].mxu0 }
0x17f0   : > { %v3284_v23 = vadd.f32 %v3622_v21, %v3283_v22  ;;  %v4036_v24 = vpop.f32.mrb[27].mxu0 }
0x17f2   : > { %v3288_v25 = vmul.f32 0.70710677, %v3284_v23  ;;  %v3287_v26 = vmul.f32 0.5, %v3284_v23 }
0x17f4   : > { %4334 = verf.f32 %v3288_v25 }
0x17fe   : > { %v4335_v0 = vpop.eup %4334 }
0x17ff   : > { %v3290_v27 = vadd.f32 1.0, %v4335_v0 }
0x1801   : > { %v3291_v28 = vmul.f32 %v3290_v27, %v3287_v26 }
0x1803   : > { %4070 = vmatmul.mubr.f32.vlgmr.msra.gmra.mrb[28].mxu1 %v3291_v28 }
0x18d6   : > { %v3383_v30 = vpop.f32.mrb[28].mxu1 }
0x18d7   : > { %v3384_v32 = vadd.f32 %v3641_v29, %v3383_v30  ;;  %v4071_v33 = vpop.f32.mrb[29].mxu1 }
0x18d9   : > { %v3395_v34 = vmul.f32 %v3643_v31, %v3384_v32 }
0x18db   : > { %v3396_v35 = vadd.f32 %v3395_v34, %v5213_v38  ;;  %v3397_v38 = vld [vmem:[%s5383_s23] sm:$0x1] }
0x18dd   : > { %v3400_v36 = vsel %vm3399_vm9, %v3396_v35, 0.0 }
0x18de   : > { %3401 = vadd.xlane.f32.xlu0 %v3400_v36 }
0x196b   : > { %v3402_v37 = vpop.xlane.xlu0 %3401 }
0x196c   : > { %v3403_v3 = vmul.f32 0.03125, %v3402_v37 }
0x196e   : > { %v3404_v39 = vsub.f32 %v3396_v35, %v3403_v3 }
0x1970   : > { %v3405_v40 = vmul.f32 %v3404_v39, %v3404_v39 }
0x1972   : > { %v3406_v41 = vsel %vm3399_vm9, %v3405_v40, 0.0 }
0x1973   : > { %3407 = vadd.xlane.f32.xlu1 %v3406_v41 }
0x1a00   : > { %v3408_v44 = vpop.xlane.xlu1 %3407 }
0x1a01   : > { %v3409_v45 = vmul.f32 0.03125, %v3408_v44 }
0x1a03   : > { %v3410_v46 = vadd.f32 1e-06, %v3409_v45 }
0x1a05   : > { %4336 = vrsqrt.f32 %v3410_v46 }
0x1a0f   : > { %v4337_v42 = vpop.eup %4336 }
0x1a10   : > { %v3412_v48 = vmul.f32 %v4337_v42, %v3404_v39 }
0x1a12   : > { %v3413_v50 = vmul.f32 %v3412_v48, %v3397_v38 }
0x1a14   : > { %v3414_v51 = vadd.f32 %v3413_v50, %v3398_v49 }
0x1a16   : > { %3415 = vst.msk [vmem:[%s771_s6] sm:$0x1] %vm3399_vm9, %v3414_v51 }
0x1a17   : > { %4379 = shalt.err (!%p4376_p7)
}
0x1a18   : > { %s4380_s1 = scalar_lea.hbm %s5317_s10, 16  ;;  %s4384_s5 = scalar_lea.hbm %s5446_s3, 32 }
0x1a19   : > { %p4381_p8 = scmp.ne.s32.totalorder %s5317_s10, %s4380_s1  ;;  %p4385_p1 = scmp.lt.u32.totalorder %s5317_s10, %s5446_s3 }
0x1a1a   : > { %p4386_p0 = scmp.lt.u32.totalorder %s4384_s5, %s4380_s1  ;;  %p4388_p6 = scmp.lt.u32.totalorder %s4380_s1, %s5317_s10 }
0x1a1b   : > { %p4382_p11 = pnand %p4381_p8, %p5447_p9 }
0x1a1c   : > { %p4387_p5 = por %p4386_p0, %p4385_p1 }
0x1a1d   : > { %p4383_p13 = pneg %p4382_p11 }
0x1a1e   : > { %p4389_p10 = por %p4388_p6, %p4387_p5 }
0x1a20   : > { %p4390_p12 = pnand %p4389_p10, %p4383_p13 }
0x1a22   : > { %4393 = shalt.err (!%p4390_p12)
}
0x1a23   : > { %4256 = dma.vmem_to_hbm [thread:$0]  (%p5447_p9), %s5319_s29, 16, %s5317_s10, %s3417_s27  }
0x1a24 PF: > { %s5448_s24 = sld [smem:[#allocation10_spill]]  ;;  %s5449_s7 = sld [smem:[#allocation8_spill]] }
0x1a25   : > { %s5450_s0 = sld [smem:[#allocation13_spill]] }
0x1a2a   : > { %p4268_p2 = scmp.ge.s32.totalorder %s5448_s24, 2  ;;  %s3441_s30 = sand.u32 1, %s5449_s7  }
0x1a2b   : > { %p5451_p3 = scmp.ne.s32.totalorder %s5450_s0, 0  ;;  %s3442_s8 = scalar_lea.sflag [#allocation4], %s3441_s30 }
0x1a2d   : > { %p4263_p4 = pnand %p4268_p2, %p5451_p3 }
0x1a2f   : > { %4415 = dma.done.wait (!%p4263_p4), %s3442_s8, 16  }
0x1a30   : > { %4417 = vsyncadd (!%p4263_p4), %s3442_s8, 4294967280  ;;  %s5452_s30 = sld [smem:[#allocation11_spill]]  ;;  %s5453_s1 = sld [smem:[#allocation9_spill]] }
0x1a31   : > { %s5454_s6 = sld [smem:[#allocation12_spill]]  ;;  %s5455_s29 = smov %s4424_s2 }
0x1a36   : > { %p36_p7 = scmp.ge.s32.totalorder %s5452_s30, 4   ;;  %s5456_s2 = smov %s5453_s1 }
0x1a38   :  { %38 = sbr.rel (!%p36_p7) target bundleno = 19 (0x13), region = 192 }
0x1a3f   :  { %3446 = vsyncpa [#allocation3], 1 }
0x1a40   :  { %3448 = vsyncpa [#allocation3 + $0x1], 1 }
0x1a41   :  { %3449 = vsyncpa [#allocation4], 1 }
0x1a42   :  { %3451 = vsyncpa [#allocation4 + $0x1], 1 }

</bundles_post_ra>
